<compile_context>
chip_gen: v7x
topology: tpu7x:2x2x1
jax: 0.10.0
libtpu: 0.0.40
codegen_flags: <defaults>
</compile_context>

<pallas_src>
import jax
import jax.numpy as jnp
from jax.experimental import pallas as pl
from jax.experimental.pallas import tpu as pltpu

N_EMBD = 256          # module hard-codes n_embd = 256
N_HEAD = 1
HEAD_SIZE = N_EMBD // N_HEAD
HIDDEN = 4 * N_EMBD
EPS = 1e-5            # torch.nn.LayerNorm default eps


def _layernorm(x, gamma, beta):
    mean = jnp.mean(x, axis=-1, keepdims=True)
    var = jnp.mean((x - mean) ** 2, axis=-1, keepdims=True)
    return (x - mean) * jax.lax.rsqrt(var + EPS) * gamma + beta


def block_kernel(x_ref,
                 g1_ref, bta1_ref,
                 wqkv_ref, bqkv_ref,
                 wp_ref, bp_ref,
                 g2_ref, bta2_ref,
                 w1_ref, b1_ref, w2_ref, b2_ref,
                 o_ref):
    # One grid step processes BB whole batch elements: x is (BB, T, C).
    BB, T, C = x_ref.shape
    x = x_ref[...]                           # f32
    xf = x.reshape(BB * T, C)                # flattened rows for the linears

    # ---- x + sa(ln_1(x)) : single head, head_size == n_embd ----
    h = _layernorm(xf, g1_ref[...], bta1_ref[...])          # f32
    qkv = jnp.dot(h.astype(jnp.bfloat16), wqkv_ref[...],
                  preferred_element_type=jnp.float32) + bqkv_ref[...]
    q = qkv[:, :C].reshape(BB, T, C)          # scale already folded into W_q/b_q
    k = qkv[:, C:2 * C].reshape(BB, T, C)
    v = qkv[:, 2 * C:].reshape(BB, T, C)

    # att = q @ k^T  (scale pre-folded).  Batched contraction on the shared
    # last dim -- k is never transposed.
    # TODO(synk): verify via bundle dump that no XLU relayout is emitted for k.
    att = jnp.einsum("btd,bsd->bts",
                     q.astype(jnp.bfloat16), k.astype(jnp.bfloat16),
                     preferred_element_type=jnp.float32)

    # causal (tril) mask: single 2-D compare, broadcast over the batch dim.
    row = jax.lax.broadcasted_iota(jnp.int32, (T, T), 0)
    col = jax.lax.broadcasted_iota(jnp.int32, (T, T), 1)
    causal = (row >= col)[None, :, :]
    att = jnp.where(causal, att, -1e30)

    # softmax over last dim (f32 elementwise, EUP reciprocal)
    att = att - jnp.max(att, axis=-1, keepdims=True)
    p = jnp.exp(att)
    p = p * pl.reciprocal(jnp.sum(p, axis=-1, keepdims=True), approx=True)

    sa = jnp.einsum("bts,bsd->btd",
                    p.astype(jnp.bfloat16), v.astype(jnp.bfloat16),
                    preferred_element_type=jnp.float32)          # (BB, T, C)
    sa = sa.reshape(BB * T, C)
    sa = jnp.dot(sa.astype(jnp.bfloat16), wp_ref[...],
                 preferred_element_type=jnp.float32) + bp_ref[...]
    x1 = xf + sa

    # ---- x1 + ffwd(ln_2(x1)) ----
    h2 = _layernorm(x1, g2_ref[...], bta2_ref[...])
    f = jnp.dot(h2.astype(jnp.bfloat16), w1_ref[...],
                preferred_element_type=jnp.float32) + b1_ref[...]
    # bf16 ReLU on the widest (1024-lane) intermediate; cast and ReLU commute.
    f = jnp.maximum(f.astype(jnp.bfloat16), jnp.bfloat16(0.0))
    f = jnp.dot(f, w2_ref[...],
                preferred_element_type=jnp.float32) + b2_ref[...]

    o_ref[...] = (x1 + f).reshape(BB, T, C)


def _batches_per_step(B, T, target_rows=1024, min_steps=2):
    """Largest divisor BB of B with BB*T <= target_rows while keeping the grid
    length >= min_steps (so both v7x TensorCores get work and pipelining
    stays alive). Falls back gracefully for tiny B."""
    best = 1
    for bb in range(1, B + 1):
        if B % bb != 0:
            continue
        steps = B // bb
        if bb * T <= max(target_rows, T) and (steps >= min_steps or B < min_steps):
            best = max(best, bb)
    return best


def prepare_params(params):
    """One-time parameter preprocessing (hoisted out of the forward path):
    fuse QKV, fold the 1/sqrt(C) attention scale into the Q slice, and cast
    matmul weights to bf16 (f32 accumulation happens in-kernel)."""
    (g1, bta1, wq, bq, wk, bk, wv, bv, wp, bp,
     g2, bta2, w1, b1, w2, b2) = params
    scale = jnp.float32(N_EMBD) ** -0.5
    wqkv = jnp.concatenate([wq * scale, wk, wv], axis=1).astype(jnp.bfloat16)
    bqkv = jnp.concatenate([bq * scale, bk, bv], axis=1).astype(jnp.float32)
    return (g1, bta1, wqkv, bqkv,
            wp.astype(jnp.bfloat16), bp,
            g2, bta2,
            w1.astype(jnp.bfloat16), b1,
            w2.astype(jnp.bfloat16), b2)


def transformer_block(x, prepared):
    (g1, bta1, wqkv, bqkv, wp_b, bp,
     g2, bta2, w1_b, b1, w2_b, b2) = prepared

    B, T, C = x.shape
    assert C == N_EMBD

    BB = _batches_per_step(B, T)
    grid = (B // BB,)

    def full2d(shape):
        return pl.BlockSpec(shape, lambda i: (0, 0))

    in_specs = [
        pl.BlockSpec((BB, T, C), lambda i: (i, 0, 0)),     # x
        full2d((1, C)), full2d((1, C)),                    # ln_1 gamma, beta
        full2d((C, 3 * C)), full2d((1, 3 * C)),            # fused W_qkv, b_qkv
        full2d((C, C)), full2d((1, C)),                    # W_proj, b_proj
        full2d((1, C)), full2d((1, C)),                    # ln_2 gamma, beta
        full2d((C, HIDDEN)), full2d((1, HIDDEN)),          # ffwd l1
        full2d((HIDDEN, C)), full2d((1, C)),               # ffwd l2
    ]
    out_spec = pl.BlockSpec((BB, T, C), lambda i: (i, 0, 0))

    return pl.pallas_call(
        block_kernel,
        out_shape=jax.ShapeDtypeStruct((B, T, C), jnp.float32),
        grid=grid,
        in_specs=in_specs,
        out_specs=out_spec,
        compiler_params=pltpu.CompilerParams(
            dimension_semantics=("parallel",),
            vmem_limit_bytes=32 * 1024 * 1024),
    )(x, g1, bta1, wqkv, bqkv, wp_b, bp, g2, bta2, w1_b, b1, w2_b, b2)


def make_params(key):
    ks = jax.random.split(key, 8)
    w = lambda k, i, o: (jax.random.normal(k, (i, o), jnp.float32) * 0.02)
    zeros = lambda n: jnp.zeros((1, n), jnp.float32)
    ones = lambda n: jnp.ones((1, n), jnp.float32)
    params = (
        ones(N_EMBD), zeros(N_EMBD),                     # ln_1
        w(ks[0], N_EMBD, HEAD_SIZE), zeros(HEAD_SIZE),   # query
        w(ks[1], N_EMBD, HEAD_SIZE), zeros(HEAD_SIZE),   # key
        w(ks[2], N_EMBD, HEAD_SIZE), zeros(HEAD_SIZE),   # value
        w(ks[3], N_EMBD, N_EMBD), zeros(N_EMBD),         # proj
        ones(N_EMBD), zeros(N_EMBD),                     # ln_2
        w(ks[4], N_EMBD, HIDDEN), zeros(HIDDEN),         # ffwd l1
        w(ks[5], HIDDEN, N_EMBD), zeros(N_EMBD),         # ffwd l2
    )
    return params


def reference(x, params):
    (g1, bta1, wq, bq, wk, bk, wv, bv, wp, bp,
     g2, bta2, w1, b1, w2, b2) = params

    def ln(z, g, b):
        m = z.mean(-1, keepdims=True)
        v = ((z - m) ** 2).mean(-1, keepdims=True)
        return (z - m) / jnp.sqrt(v + EPS) * g + b

    h = ln(x, g1, bta1)
    q = h @ wq + bq
    k = h @ wk + bk
    v = h @ wv + bv
    att = jnp.einsum("btd,bsd->bts", q, k) * (N_EMBD ** -0.5)
    T = x.shape[1]
    mask = jnp.tril(jnp.ones((T, T), bool))
    att = jnp.where(mask, att, -jnp.inf)
    att = jax.nn.softmax(att, axis=-1)
    sa = (att @ v) @ wp + bp
    x1 = x + sa
    h2 = ln(x1, g2, bta2)
    f = jax.nn.relu(h2 @ w1 + b1) @ w2 + b2
    return x1 + f


if __name__ == "__main__":
    key = jax.random.PRNGKey(0)
    kx, kp = jax.random.split(key)

    B, T = 2, 8                         # small shapes; T <= block_size (128)
    x = jax.random.normal(kx, (B, T, N_EMBD), jnp.float32)
    params = make_params(kp)

    prepared = prepare_params(params)   # one-time weight fusion / bf16 cast
    out = transformer_block(x, prepared)
    out = jax.block_until_ready(out)

    ref = reference(x, params)
    assert out.shape == (B, T, N_EMBD)
    assert jnp.allclose(out, ref, rtol=2e-2, atol=2e-2), "mismatch vs JAX reference"

    print("KERNEL_OK")
</pallas_src>

<mosaic_0001>
module attributes {stable_mosaic.version = 11 : i64} {
  func.func @block_kernel(%arg0: i32, %arg1: memref<1x8x256xf32, #tpu.memory_space<vmem>>, %arg2: memref<1x256xf32, #tpu.memory_space<vmem>>, %arg3: memref<1x256xf32, #tpu.memory_space<vmem>>, %arg4: memref<256x768xbf16, #tpu.memory_space<vmem>>, %arg5: memref<1x768xf32, #tpu.memory_space<vmem>>, %arg6: memref<256x256xbf16, #tpu.memory_space<vmem>>, %arg7: memref<1x256xf32, #tpu.memory_space<vmem>>, %arg8: memref<1x256xf32, #tpu.memory_space<vmem>>, %arg9: memref<1x256xf32, #tpu.memory_space<vmem>>, %arg10: memref<256x1024xbf16, #tpu.memory_space<vmem>>, %arg11: memref<1x1024xf32, #tpu.memory_space<vmem>>, %arg12: memref<1024x256xbf16, #tpu.memory_space<vmem>>, %arg13: memref<1x256xf32, #tpu.memory_space<vmem>>, %arg14: memref<1x8x256xf32, #tpu.memory_space<vmem>>) attributes {dimension_semantics = [#tpu.dimension_semantics<parallel>], iteration_bounds = array<i64: 2>, scalar_prefetch = 0 : i64, scratch_operands = 0 : i64, tpu.core_type = #tpu.core_type<tc>, window_params = [{transform_indices = @transform_0, window_bounds = array<i64: 1, 8, 256>}, {pipeline_mode = #tpu.pipeline_mode<synchronous>, transform_indices = @transform_1, window_bounds = array<i64: 1, 256>}, {pipeline_mode = #tpu.pipeline_mode<synchronous>, transform_indices = @transform_2, window_bounds = array<i64: 1, 256>}, {pipeline_mode = #tpu.pipeline_mode<synchronous>, transform_indices = @transform_3, window_bounds = array<i64: 256, 768>}, {pipeline_mode = #tpu.pipeline_mode<synchronous>, transform_indices = @transform_4, window_bounds = array<i64: 1, 768>}, {pipeline_mode = #tpu.pipeline_mode<synchronous>, transform_indices = @transform_5, window_bounds = array<i64: 256, 256>}, {pipeline_mode = #tpu.pipeline_mode<synchronous>, transform_indices = @transform_6, window_bounds = array<i64: 1, 256>}, {pipeline_mode = #tpu.pipeline_mode<synchronous>, transform_indices = @transform_7, window_bounds = array<i64: 1, 256>}, {pipeline_mode = #tpu.pipeline_mode<synchronous>, transform_indices = @transform_8, window_bounds = array<i64: 1, 256>}, {pipeline_mode = #tpu.pipeline_mode<synchronous>, transform_indices = @transform_9, window_bounds = array<i64: 256, 1024>}, {pipeline_mode = #tpu.pipeline_mode<synchronous>, transform_indices = @transform_10, window_bounds = array<i64: 1, 1024>}, {pipeline_mode = #tpu.pipeline_mode<synchronous>, transform_indices = @transform_11, window_bounds = array<i64: 1024, 256>}, {pipeline_mode = #tpu.pipeline_mode<synchronous>, transform_indices = @transform_12, window_bounds = array<i64: 1, 256>}, {transform_indices = @transform_13, window_bounds = array<i64: 1, 8, 256>}]} {
    %c0 = arith.constant 0 : index
    %c0_0 = arith.constant 0 : index
    %c0_1 = arith.constant 0 : index
    %0 = vector.load %arg1[%c0, %c0_0, %c0_1] : memref<1x8x256xf32, #tpu.memory_space<vmem>>, vector<1x8x256xf32>
    %1 = vector.shape_cast %0 : vector<1x8x256xf32> to vector<8x256xf32>
    %c0_2 = arith.constant 0 : index
    %c0_3 = arith.constant 0 : index
    %2 = vector.load %arg2[%c0_2, %c0_3] : memref<1x256xf32, #tpu.memory_space<vmem>>, vector<1x256xf32>
    %c0_4 = arith.constant 0 : index
    %c0_5 = arith.constant 0 : index
    %3 = vector.load %arg3[%c0_4, %c0_5] : memref<1x256xf32, #tpu.memory_space<vmem>>, vector<1x256xf32>
    %cst = arith.constant dense<0.000000e+00> : vector<8xf32>
    %4 = vector.multi_reduction <add>, %1, %cst [1] : vector<8x256xf32> to vector<8xf32>
    %5 = vector.shape_cast %4 : vector<8xf32> to vector<8x1xf32>
    %cst_6 = arith.constant 2.560000e+02 : f32
    %6 = vector.broadcast %cst_6 : f32 to vector<8x1xf32>
    %7 = arith.divf %5, %6 : vector<8x1xf32>
    %8 = vector.broadcast %7 : vector<8x1xf32> to vector<8x256xf32>
    %9 = arith.subf %1, %8 : vector<8x256xf32>
    %10 = arith.mulf %9, %9 : vector<8x256xf32>
    %cst_7 = arith.constant dense<0.000000e+00> : vector<8xf32>
    %11 = vector.multi_reduction <add>, %10, %cst_7 [1] : vector<8x256xf32> to vector<8xf32>
    %12 = vector.shape_cast %11 : vector<8xf32> to vector<8x1xf32>
    %cst_8 = arith.constant 2.560000e+02 : f32
    %13 = vector.broadcast %cst_8 : f32 to vector<8x1xf32>
    %14 = arith.divf %12, %13 : vector<8x1xf32>
    %15 = vector.broadcast %7 : vector<8x1xf32> to vector<8x256xf32>
    %16 = arith.subf %1, %15 : vector<8x256xf32>
    %cst_9 = arith.constant 9.99999974E-6 : f32
    %17 = vector.broadcast %cst_9 : f32 to vector<8x1xf32>
    %18 = arith.addf %14, %17 : vector<8x1xf32>
    %19 = math.rsqrt %18 : vector<8x1xf32>
    %20 = vector.broadcast %19 : vector<8x1xf32> to vector<8x256xf32>
    %21 = arith.mulf %16, %20 : vector<8x256xf32>
    %22 = vector.broadcast %2 : vector<1x256xf32> to vector<8x256xf32>
    %23 = arith.mulf %21, %22 : vector<8x256xf32>
    %24 = vector.broadcast %3 : vector<1x256xf32> to vector<8x256xf32>
    %25 = arith.addf %23, %24 : vector<8x256xf32>
    %26 = arith.truncf %25 : vector<8x256xf32> to vector<8x256xbf16>
    %c0_10 = arith.constant 0 : index
    %c0_11 = arith.constant 0 : index
    %27 = vector.load %arg4[%c0_10, %c0_11] : memref<256x768xbf16, #tpu.memory_space<vmem>>, vector<256x768xbf16>
    %cst_12 = arith.constant dense<0.000000e+00> : vector<8x768xf32>
    %28 = tpu.matmul %26, %27, %cst_12 {dimension_numbers = #tpu.dot_dimension_numbers<[1], [0], [0], [1], [0, 0, 1, 1], [], []>} : vector<8x256xbf16>, vector<256x768xbf16>, vector<8x768xf32> -> vector<8x768xf32>
    %c0_13 = arith.constant 0 : index
    %c0_14 = arith.constant 0 : index
    %29 = vector.load %arg5[%c0_13, %c0_14] : memref<1x768xf32, #tpu.memory_space<vmem>>, vector<1x768xf32>
    %30 = vector.broadcast %29 : vector<1x768xf32> to vector<8x768xf32>
    %31 = arith.addf %28, %30 : vector<8x768xf32>
    %32 = vector.extract_strided_slice %31 {offsets = [0, 0], sizes = [8, 256], strides = [1, 1]} : vector<8x768xf32> to vector<8x256xf32>
    %33 = vector.shape_cast %32 : vector<8x256xf32> to vector<1x8x256xf32>
    %34 = vector.extract_strided_slice %31 {offsets = [0, 256], sizes = [8, 256], strides = [1, 1]} : vector<8x768xf32> to vector<8x256xf32>
    %35 = vector.shape_cast %34 : vector<8x256xf32> to vector<1x8x256xf32>
    %36 = vector.extract_strided_slice %31 {offsets = [0, 512], sizes = [8, 256], strides = [1, 1]} : vector<8x768xf32> to vector<8x256xf32>
    %37 = vector.shape_cast %36 : vector<8x256xf32> to vector<1x8x256xf32>
    %38 = arith.truncf %33 : vector<1x8x256xf32> to vector<1x8x256xbf16>
    %39 = arith.truncf %35 : vector<1x8x256xf32> to vector<1x8x256xbf16>
    "tpu.trace_start"() <{level = 10 : i32, message = "btd,bsd->bts"}> : () -> ()
    %cst_15 = arith.constant dense<0.000000e+00> : vector<1x8x8xf32>
    %40 = tpu.matmul %38, %39, %cst_15 {dimension_numbers = #tpu.dot_dimension_numbers<[2], [2], [1], [1], [0, 0, 0, 1, 1, 1], [0], [0]>} : vector<1x8x256xbf16>, vector<1x8x256xbf16>, vector<1x8x8xf32> -> vector<1x8x8xf32>
    "tpu.trace_stop"() : () -> ()
    %41 = tpu.iota {dimensions = array<i32: 0>} : vector<8x8xi32>
    %42 = tpu.iota {dimensions = array<i32: 1>} : vector<8x8xi32>
    %43 = arith.cmpi sge, %41, %42 : vector<8x8xi32>
    %44 = vector.shape_cast %43 : vector<8x8xi1> to vector<1x8x8xi1>
    %cst_16 = arith.constant -1.000000e+30 : f32
    %45 = vector.broadcast %cst_16 : f32 to vector<1x8x8xf32>
    %46 = arith.select %44, %40, %45 : vector<1x8x8xi1>, vector<1x8x8xf32>
    %cst_17 = arith.constant dense<0xFF800000> : vector<1x8xf32>
    %47 = vector.multi_reduction <maximumf>, %46, %cst_17 [2] : vector<1x8x8xf32> to vector<1x8xf32>
    %48 = vector.shape_cast %47 : vector<1x8xf32> to vector<1x8x1xf32>
    %49 = vector.broadcast %48 : vector<1x8x1xf32> to vector<1x8x8xf32>
    %50 = arith.subf %46, %49 : vector<1x8x8xf32>
    %51 = math.exp %50 : vector<1x8x8xf32>
    %cst_18 = arith.constant dense<0.000000e+00> : vector<1x8xf32>
    %52 = vector.multi_reduction <add>, %51, %cst_18 [2] : vector<1x8x8xf32> to vector<1x8xf32>
    %53 = vector.shape_cast %52 : vector<1x8xf32> to vector<1x8x1xf32>
    %54 = tpu.reciprocal %53 {approx = true} : vector<1x8x1xf32> -> vector<1x8x1xf32>
    %55 = vector.broadcast %54 : vector<1x8x1xf32> to vector<1x8x8xf32>
    %56 = arith.mulf %51, %55 : vector<1x8x8xf32>
    %57 = arith.truncf %56 : vector<1x8x8xf32> to vector<1x8x8xbf16>
    %58 = arith.truncf %37 : vector<1x8x256xf32> to vector<1x8x256xbf16>
    "tpu.trace_start"() <{level = 10 : i32, message = "bts,bsd->btd"}> : () -> ()
    %cst_19 = arith.constant dense<0.000000e+00> : vector<1x8x256xf32>
    %59 = tpu.matmul %57, %58, %cst_19 {dimension_numbers = #tpu.dot_dimension_numbers<[2], [1], [1], [2], [0, 0, 0, 1, 1, 2], [0], [0]>} : vector<1x8x8xbf16>, vector<1x8x256xbf16>, vector<1x8x256xf32> -> vector<1x8x256xf32>
    "tpu.trace_stop"() : () -> ()
    %60 = vector.shape_cast %59 : vector<1x8x256xf32> to vector<8x256xf32>
    %61 = arith.truncf %60 : vector<8x256xf32> to vector<8x256xbf16>
    %c0_20 = arith.constant 0 : index
    %c0_21 = arith.constant 0 : index
    %62 = vector.load %arg6[%c0_20, %c0_21] : memref<256x256xbf16, #tpu.memory_space<vmem>>, vector<256x256xbf16>
    %cst_22 = arith.constant dense<0.000000e+00> : vector<8x256xf32>
    %63 = tpu.matmul %61, %62, %cst_22 {dimension_numbers = #tpu.dot_dimension_numbers<[1], [0], [0], [1], [0, 0, 1, 1], [], []>} : vector<8x256xbf16>, vector<256x256xbf16>, vector<8x256xf32> -> vector<8x256xf32>
    %c0_23 = arith.constant 0 : index
    %c0_24 = arith.constant 0 : index
    %64 = vector.load %arg7[%c0_23, %c0_24] : memref<1x256xf32, #tpu.memory_space<vmem>>, vector<1x256xf32>
    %65 = vector.broadcast %64 : vector<1x256xf32> to vector<8x256xf32>
    %66 = arith.addf %63, %65 : vector<8x256xf32>
    %67 = arith.addf %1, %66 : vector<8x256xf32>
    %c0_25 = arith.constant 0 : index
    %c0_26 = arith.constant 0 : index
    %68 = vector.load %arg8[%c0_25, %c0_26] : memref<1x256xf32, #tpu.memory_space<vmem>>, vector<1x256xf32>
    %c0_27 = arith.constant 0 : index
    %c0_28 = arith.constant 0 : index
    %69 = vector.load %arg9[%c0_27, %c0_28] : memref<1x256xf32, #tpu.memory_space<vmem>>, vector<1x256xf32>
    %cst_29 = arith.constant dense<0.000000e+00> : vector<8xf32>
    %70 = vector.multi_reduction <add>, %67, %cst_29 [1] : vector<8x256xf32> to vector<8xf32>
    %71 = vector.shape_cast %70 : vector<8xf32> to vector<8x1xf32>
    %cst_30 = arith.constant 2.560000e+02 : f32
    %72 = vector.broadcast %cst_30 : f32 to vector<8x1xf32>
    %73 = arith.divf %71, %72 : vector<8x1xf32>
    %74 = vector.broadcast %73 : vector<8x1xf32> to vector<8x256xf32>
    %75 = arith.subf %67, %74 : vector<8x256xf32>
    %76 = arith.mulf %75, %75 : vector<8x256xf32>
    %cst_31 = arith.constant dense<0.000000e+00> : vector<8xf32>
    %77 = vector.multi_reduction <add>, %76, %cst_31 [1] : vector<8x256xf32> to vector<8xf32>
    %78 = vector.shape_cast %77 : vector<8xf32> to vector<8x1xf32>
    %cst_32 = arith.constant 2.560000e+02 : f32
    %79 = vector.broadcast %cst_32 : f32 to vector<8x1xf32>
    %80 = arith.divf %78, %79 : vector<8x1xf32>
    %81 = vector.broadcast %73 : vector<8x1xf32> to vector<8x256xf32>
    %82 = arith.subf %67, %81 : vector<8x256xf32>
    %cst_33 = arith.constant 9.99999974E-6 : f32
    %83 = vector.broadcast %cst_33 : f32 to vector<8x1xf32>
    %84 = arith.addf %80, %83 : vector<8x1xf32>
    %85 = math.rsqrt %84 : vector<8x1xf32>
    %86 = vector.broadcast %85 : vector<8x1xf32> to vector<8x256xf32>
    %87 = arith.mulf %82, %86 : vector<8x256xf32>
    %88 = vector.broadcast %68 : vector<1x256xf32> to vector<8x256xf32>
    %89 = arith.mulf %87, %88 : vector<8x256xf32>
    %90 = vector.broadcast %69 : vector<1x256xf32> to vector<8x256xf32>
    %91 = arith.addf %89, %90 : vector<8x256xf32>
    %92 = arith.truncf %91 : vector<8x256xf32> to vector<8x256xbf16>
    %c0_34 = arith.constant 0 : index
    %c0_35 = arith.constant 0 : index
    %93 = vector.load %arg10[%c0_34, %c0_35] : memref<256x1024xbf16, #tpu.memory_space<vmem>>, vector<256x1024xbf16>
    %cst_36 = arith.constant dense<0.000000e+00> : vector<8x1024xf32>
    %94 = tpu.matmul %92, %93, %cst_36 {dimension_numbers = #tpu.dot_dimension_numbers<[1], [0], [0], [1], [0, 0, 1, 1], [], []>} : vector<8x256xbf16>, vector<256x1024xbf16>, vector<8x1024xf32> -> vector<8x1024xf32>
    %c0_37 = arith.constant 0 : index
    %c0_38 = arith.constant 0 : index
    %95 = vector.load %arg11[%c0_37, %c0_38] : memref<1x1024xf32, #tpu.memory_space<vmem>>, vector<1x1024xf32>
    %96 = vector.broadcast %95 : vector<1x1024xf32> to vector<8x1024xf32>
    %97 = arith.addf %94, %96 : vector<8x1024xf32>
    %98 = arith.truncf %97 : vector<8x1024xf32> to vector<8x1024xbf16>
    %cst_39 = arith.constant 0.000000e+00 : bf16
    %99 = vector.broadcast %cst_39 : bf16 to vector<8x1024xbf16>
    %100 = arith.maximumf %98, %99 : vector<8x1024xbf16>
    %c0_40 = arith.constant 0 : index
    %c0_41 = arith.constant 0 : index
    %101 = vector.load %arg12[%c0_40, %c0_41] : memref<1024x256xbf16, #tpu.memory_space<vmem>>, vector<1024x256xbf16>
    %cst_42 = arith.constant dense<0.000000e+00> : vector<8x256xf32>
    %102 = tpu.matmul %100, %101, %cst_42 {dimension_numbers = #tpu.dot_dimension_numbers<[1], [0], [0], [1], [0, 0, 1, 1], [], []>} : vector<8x1024xbf16>, vector<1024x256xbf16>, vector<8x256xf32> -> vector<8x256xf32>
    %c0_43 = arith.constant 0 : index
    %c0_44 = arith.constant 0 : index
    %103 = vector.load %arg13[%c0_43, %c0_44] : memref<1x256xf32, #tpu.memory_space<vmem>>, vector<1x256xf32>
    %104 = vector.broadcast %103 : vector<1x256xf32> to vector<8x256xf32>
    %105 = arith.addf %102, %104 : vector<8x256xf32>
    %106 = arith.addf %67, %105 : vector<8x256xf32>
    %107 = vector.shape_cast %106 : vector<8x256xf32> to vector<1x8x256xf32>
    %c0_45 = arith.constant 0 : index
    %c0_46 = arith.constant 0 : index
    %c0_47 = arith.constant 0 : index
    %108 = vector.load %arg14[%c0_45, %c0_46, %c0_47] : memref<1x8x256xf32, #tpu.memory_space<vmem>>, vector<1x8x256xf32>
    tpu.vector_store %arg14[%c0_45, %c0_46, %c0_47], %107 {strides = array<i32>} : memref<1x8x256xf32, #tpu.memory_space<vmem>>, vector<1x8x256xf32>,
    return
  }
  func.func @transform_0(%arg0: i32) -> (i32, i32, i32) {
    %c0_i32 = arith.constant 0 : i32
    %c0_i32_0 = arith.constant 0 : i32
    %c0_i32_1 = arith.constant 0 : i32
    return %arg0, %c0_i32, %c0_i32_0 : i32, i32, i32
  }
  func.func @transform_1(%arg0: i32) -> (i32, i32) {
    %c0_i32 = arith.constant 0 : i32
    %c0_i32_0 = arith.constant 0 : i32
    %c0_i32_1 = arith.constant 0 : i32
    return %c0_i32, %c0_i32_0 : i32, i32
  }
  func.func @transform_2(%arg0: i32) -> (i32, i32) {
    %c0_i32 = arith.constant 0 : i32
    %c0_i32_0 = arith.constant 0 : i32
    %c0_i32_1 = arith.constant 0 : i32
    return %c0_i32, %c0_i32_0 : i32, i32
  }
  func.func @transform_3(%arg0: i32) -> (i32, i32) {
    %c0_i32 = arith.constant 0 : i32
    %c0_i32_0 = arith.constant 0 : i32
    %c0_i32_1 = arith.constant 0 : i32
    return %c0_i32, %c0_i32_0 : i32, i32
  }
  func.func @transform_4(%arg0: i32) -> (i32, i32) {
    %c0_i32 = arith.constant 0 : i32
    %c0_i32_0 = arith.constant 0 : i32
    %c0_i32_1 = arith.constant 0 : i32
    return %c0_i32, %c0_i32_0 : i32, i32
  }
  func.func @transform_5(%arg0: i32) -> (i32, i32) {
    %c0_i32 = arith.constant 0 : i32
    %c0_i32_0 = arith.constant 0 : i32
    %c0_i32_1 = arith.constant 0 : i32
    return %c0_i32, %c0_i32_0 : i32, i32
  }
  func.func @transform_6(%arg0: i32) -> (i32, i32) {
    %c0_i32 = arith.constant 0 : i32
    %c0_i32_0 = arith.constant 0 : i32
    %c0_i32_1 = arith.constant 0 : i32
    return %c0_i32, %c0_i32_0 : i32, i32
  }
  func.func @transform_7(%arg0: i32) -> (i32, i32) {
    %c0_i32 = arith.constant 0 : i32
    %c0_i32_0 = arith.constant 0 : i32
    %c0_i32_1 = arith.constant 0 : i32
    return %c0_i32, %c0_i32_0 : i32, i32
  }
  func.func @transform_8(%arg0: i32) -> (i32, i32) {
    %c0_i32 = arith.constant 0 : i32
    %c0_i32_0 = arith.constant 0 : i32
    %c0_i32_1 = arith.constant 0 : i32
    return %c0_i32, %c0_i32_0 : i32, i32
  }
  func.func @transform_9(%arg0: i32) -> (i32, i32) {
    %c0_i32 = arith.constant 0 : i32
    %c0_i32_0 = arith.constant 0 : i32
    %c0_i32_1 = arith.constant 0 : i32
    return %c0_i32, %c0_i32_0 : i32, i32
  }
  func.func @transform_10(%arg0: i32) -> (i32, i32) {
    %c0_i32 = arith.constant 0 : i32
    %c0_i32_0 = arith.constant 0 : i32
    %c0_i32_1 = arith.constant 0 : i32
    return %c0_i32, %c0_i32_0 : i32, i32
  }
  func.func @transform_11(%arg0: i32) -> (i32, i32) {
    %c0_i32 = arith.constant 0 : i32
    %c0_i32_0 = arith.constant 0 : i32
    %c0_i32_1 = arith.constant 0 : i32
    return %c0_i32, %c0_i32_0 : i32, i32
  }
  func.func @transform_12(%arg0: i32) -> (i32, i32) {
    %c0_i32 = arith.constant 0 : i32
    %c0_i32_0 = arith.constant 0 : i32
    %c0_i32_1 = arith.constant 0 : i32
    return %c0_i32, %c0_i32_0 : i32, i32
  }
  func.func @transform_13(%arg0: i32) -> (i32, i32, i32) {
    %c0_i32 = arith.constant 0 : i32
    %c0_i32_0 = arith.constant 0 : i32
    %c0_i32_1 = arith.constant 0 : i32
    return %arg0, %c0_i32, %c0_i32_0 : i32, i32, i32
  }
}

</mosaic_0001>

<bundles_post_ra>
// kernel: tpu_custom_call.1
= control target key start
LH: loop header
LB: loop body
LE: loop exit
PB: predicated region body
PF: predicated region fallthrough
CT: control target
= control target key end

     0   :  { %s5558_s0 = inlined_call_operand.hbm [shape: f32[2,8,256], index: 0, kind: input, shape index: {}]   ;;  %s5559_s1 = inlined_call_operand.hbm [shape: f32[1,256], index: 1, kind: input, shape index: {}]   ;;  %s5560_s2 = inlined_call_operand.hbm [shape: f32[1,256], index: 2, kind: input, shape index: {}]   ;;  %s5561_s3 = inlined_call_operand.hbm [shape: bf16[256,768], index: 3, kind: input, shape index: {}]   ;;  %s5562_s4 = inlined_call_operand.vmem [shape: f32[1,768], index: 4, kind: input, shape index: {}]   ;;  %s5563_s5 = inlined_call_operand.hbm [shape: bf16[256,256], index: 5, kind: input, shape index: {}]   ;;  %s5564_s6 = inlined_call_operand.vmem [shape: f32[1,256], index: 6, kind: input, shape index: {}]   ;;  %s5565_s7 = inlined_call_operand.vmem [shape: f32[1,256], index: 7, kind: input, shape index: {}]   ;;  %s5566_s8 = inlined_call_operand.vmem [shape: f32[1,256], index: 8, kind: input, shape index: {}]   ;;  %s5567_s9 = inlined_call_operand.hbm [shape: bf16[256,1024], index: 9, kind: input, shape index: {}]   ;;  %s5568_s10 = inlined_call_operand.vmem [shape: f32[1,1024], index: 10, kind: input, shape index: {}]   ;;  %s5569_s11 = inlined_call_operand.hbm [shape: bf16[1024,256], index: 11, kind: input, shape index: {}]   ;;  %s5570_s12 = inlined_call_operand.vmem [shape: f32[1,256], index: 12, kind: input, shape index: {}]   ;;  %s5571_s13 = inlined_call_operand.hbm [shape: f32[2,8,256], index: 13, kind: output, shape index: {}]  }
   0x1   :  { %5576 = sst [smem:[#allocation20_spill]] %s5559_s1 }
   0x2   :  { %5577 = sst [smem:[#allocation21_spill]] %s5561_s3 }
   0x3   :  { %5578 = sst [smem:[#allocation22_spill]] %s5565_s7 }
   0x4   :  { %5579 = sst [smem:[#allocation23_spill]] %s5566_s8 }
   0x5   :  { %5580 = sst [smem:[#allocation24_spill]] %s5568_s10 }
   0x6   :  { %5581 = sst [smem:[#allocation25_spill]] %s5570_s12 }
   0x7   :  { %5582 = sst [smem:[#allocation26_spill]] %s5571_s13 }
   0x8   :  { %18 = vsyncpa [#allocation3], 0 }
   0x9   :  { %20 = vsyncpa [#allocation3 + $0x1], 0 }
   0xa   :  { %21 = vsyncpa [#allocation6], 0 }
   0xb   :  { %22 = vsyncpa [#allocation9], 0 }
   0xc   :  { %23 = vsyncpa [#allocation12], 0 }
   0xd   :  { %24 = vsyncpa [#allocation4], 0 }
   0xe   :  { %26 = vsyncpa [#allocation4 + $0x1], 0  ;;  %s5097_s25 = smov 0   ;;  %s5099_s26 = smov 0  }
   0xf   :  { %s5101_s27 = smov 0   ;;  %s5103_s28 = smov 0  }
  0x10 LB: > { %s5012_s29 = smov [#allocation5]   ;;  %s5118_s14 = sadd.s32 4294967295, %s5010_s28   ;;  %s5010_s28 = sphi %s5103_s28, %s5612_s28   ;;  %s5006_s27 = sphi %s5101_s27, %s5611_s27   ;;  %s5002_s26 = sphi %s5099_s26, %s5610_s26   ;;  %s4998_s25 = sphi %s5097_s25, %s5609_s25  }
  0x11   : > { %s354_s30 = sshll.u32 %s5012_s29, 4  ;;  %p3813_p0 = scmp.ge.s32.totalorder %s5010_s28, 1  ;;  %s355_s30 = int_to_ptr.vmem [resolvable:$true] %s354_s30 }
  0x12   : > { %p5573_p1 = scmp.eq.s32.totalorder %s5118_s14, 0  ;;  %p341_p2 = scmp.lt.s32.totalorder %s5010_s28, 3 }
  0x13   : > { %s5013_s16 = smov [#allocation8]   ;;  %s5014_s19 = smov [#allocation11]  }
  0x14   : > { %p5123_p3 = pnand %p3813_p0, %p341_p2  ;;  %s375_s17 = sshll.u32 %s5013_s16, 4  ;;  %s5130_s17 = int_to_ptr.vmem [resolvable:$true] %s375_s17 }
  0x15   : > { %s413_s20 = sshll.u32 %s5014_s19, 4  ;;  %s5585_s1 = sld [smem:[#allocation20_spill]]  ;;  %s5138_s20 = int_to_ptr.vmem [resolvable:$true] %s413_s20 }
  0x16   : > { %s5583_s15 = scalar_select %p5123_p3, 1, 0 }
  0x17   : > { %p4254_p5 = pneg %p5123_p3 }
  0x19   : > { %p5134_p6 = pnand %p4254_p5, %p5573_p1 }
  0x1b   : > { %s4734_s23 = scalar_lea.hbm %s5585_s1, 32  ;;  %p5148_p8 = pneg %p5134_p6 }
  0x1c   : > { %p4735_p7 = scmp.ne.s32.totalorder %s5585_s1, %s4734_s23  ;;  %p4741_p11 = scmp.lt.u32.totalorder %s4734_s23, %s5585_s1 }
  0x1e   : > { %p4737_p9 = pnand %p5148_p8, %p4735_p7 }
  0x20   : > { %p4738_p10 = pneg %p4737_p9 }
  0x22   : > { %p4743_p12 = pnand %p4741_p11, %p4738_p10 }
  0x24   : > { %4746 = shalt.err (!%p4743_p12)
}
  0x25   : > { %s4747_s21 = scalar_lea.vmem %s355_s30, 32  ;;  %p4755_p5 = scmp.lt.s32.totalorder %s355_s30, %s355_s30 }
  0x26   : > { %p4748_p13 = scmp.ne.s32.totalorder %s355_s30, %s4747_s21  ;;  %p4756_p4 = scmp.lt.s32.totalorder %s4747_s21, %s4747_s21 }
  0x28   : > { %p4750_p0 = pnand %p4748_p13, %p5148_p8  ;;  %p4757_p1 = por %p4756_p4, %p4755_p5 }
  0x2a   : > { %p4751_p2 = pneg %p4750_p0 }
  0x2c   : > { %p4758_p3 = pnand %p4757_p1, %p4751_p2 }
  0x2e   : > { %4761 = shalt.err (!%p4758_p3)
}
  0x2f   : > { %4257 = dma.hbm_to_vmem [thread:$0]  (!%p5134_p6), %s5585_s1, 32, %s355_s30, [#allocation6]  }
  0x30   : > { %s5587_s3 = sld [smem:[#allocation21_spill]] }
  0x36   : > { %s4762_s29 = scalar_lea.hbm %s5587_s3, 12288 }
  0x37   : > { %p4763_p7 = scmp.ne.s32.totalorder %s5587_s3, %s4762_s29  ;;  %p4769_p1 = scmp.lt.u32.totalorder %s4762_s29, %s5587_s3 }
  0x39   : > { %p4765_p9 = pnand %p4763_p7, %p5148_p8 }
  0x3b   : > { %p4766_p4 = pneg %p4765_p9 }
  0x3d   : > { %p4771_p3 = pnand %p4769_p1, %p4766_p4 }
  0x3f   : > { %4774 = shalt.err (!%p4771_p3)
}
  0x40   : > { %s4775_s30 = scalar_lea.vmem %s5130_s17, 12288  ;;  %p4783_p13 = scmp.lt.s32.totalorder %s5130_s17, %s5130_s17 }
  0x41   : > { %p4776_p10 = scmp.ne.s32.totalorder %s5130_s17, %s4775_s30  ;;  %p4784_p0 = scmp.lt.s32.totalorder %s4775_s30, %s4775_s30 }
  0x43   : > { %p4778_p11 = pnand %p4776_p10, %p5148_p8  ;;  %p4785_p2 = por %p4784_p0, %p4783_p13 }
  0x45   : > { %p4779_p12 = pneg %p4778_p11 }
  0x47   : > { %p4786_p5 = pnand %p4785_p2, %p4779_p12 }
  0x49   : > { %4789 = shalt.err (!%p4786_p5)
}
  0x4a   : > { %s5015_s12 = smov 384   ;;  %s5016_s10 = smov 24  }
  0x4b   : > { %4263 = dma.hbm_to_vmem [thread:$0]  (!%p5134_p6), %s5587_s3, 12288, %s5130_s17, [#allocation9], %s5015_s12, %s5015_s12, %s5016_s10  }
  0x4c   : > { %s4790_s29 = scalar_lea.hbm %s5567_s9, 16384 }
  0x4d   : > { %p4791_p7 = scmp.ne.s32.totalorder %s5567_s9, %s4790_s29  ;;  %p4797_p1 = scmp.lt.u32.totalorder %s4790_s29, %s5567_s9 }
  0x4f   : > { %p4793_p9 = pnand %p4791_p7, %p5148_p8 }
  0x51   : > { %p4794_p4 = pneg %p4793_p9 }
  0x53   : > { %p4799_p3 = pnand %p4797_p1, %p4794_p4 }
  0x55   : > { %4802 = shalt.err (!%p4799_p3)
}
  0x56   : > { %s4803_s17 = scalar_lea.vmem %s5138_s20, 16384  ;;  %p4811_p13 = scmp.lt.s32.totalorder %s5138_s20, %s5138_s20 }
  0x57   : > { %p4804_p10 = scmp.ne.s32.totalorder %s5138_s20, %s4803_s17  ;;  %p4812_p0 = scmp.lt.s32.totalorder %s4803_s17, %s4803_s17 }
  0x59   : > { %p4806_p11 = pnand %p4804_p10, %p5148_p8  ;;  %p4813_p2 = por %p4812_p0, %p4811_p13 }
  0x5b   : > { %p4807_p12 = pneg %p4806_p11 }
  0x5d   : > { %p4814_p5 = pnand %p4813_p2, %p4807_p12 }
  0x5f   : > { %4817 = shalt.err (!%p4814_p5)
}
  0x60   : > { %s5017_s12 = smov 512   ;;  %s5018_s1 = smov 32  }
  0x61   : > { %4269 = dma.hbm_to_vmem [thread:$0]  (!%p5134_p6), %s5567_s9, 16384, %s5138_s20, [#allocation12], %s5017_s12, %s5017_s12, %s5018_s1  }
  0x62   : > { %s5019_s24 = smov [#allocation7]   ;;  %s5020_s23 = smov [#allocation10]  }
  0x63   : > { %s365_s13 = sshll.u32 %s5019_s24, 4  ;;  %s391_s29 = sshll.u32 %s5020_s23, 4  ;;  %s366_s13 = int_to_ptr.vmem [resolvable:$true] %s365_s13  ;;  %s392_s29 = int_to_ptr.vmem [resolvable:$true] %s391_s29 }
  0x64   : > { %s4818_s30 = scalar_lea.hbm %s5560_s2, 32 }
  0x65   : > { %p4819_p7 = scmp.ne.s32.totalorder %s5560_s2, %s4818_s30  ;;  %p4825_p1 = scmp.lt.u32.totalorder %s4818_s30, %s5560_s2 }
  0x67   : > { %p4821_p9 = pnand %p4819_p7, %p5148_p8 }
  0x69   : > { %p4822_p4 = pneg %p4821_p9 }
  0x6b   : > { %p4827_p3 = pnand %p4825_p1, %p4822_p4 }
  0x6d   : > { %4830 = shalt.err (!%p4827_p3)
}
  0x6e   : > { %s4831_s20 = scalar_lea.vmem %s366_s13, 32  ;;  %p4839_p13 = scmp.lt.s32.totalorder %s366_s13, %s366_s13 }
  0x6f   : > { %p4832_p10 = scmp.ne.s32.totalorder %s366_s13, %s4831_s20  ;;  %p4840_p0 = scmp.lt.s32.totalorder %s4831_s20, %s4831_s20 }
  0x71   : > { %p4834_p11 = pnand %p4832_p10, %p5148_p8  ;;  %p4841_p2 = por %p4840_p0, %p4839_p13 }
  0x73   : > { %p4835_p12 = pneg %p4834_p11 }
  0x75   : > { %p4842_p5 = pnand %p4841_p2, %p4835_p12 }
  0x77   : > { %4845 = shalt.err (!%p4842_p5)
}
  0x78   : > { %4260 = dma.hbm_to_vmem [thread:$0]  (!%p5134_p6), %s5560_s2, 32, %s366_s13, [#allocation6]  }
  0x79   : > { %s4846_s1 = scalar_lea.hbm %s5563_s5, 4096 }
  0x7a   : > { %p4847_p7 = scmp.ne.s32.totalorder %s5563_s5, %s4846_s1  ;;  %p4853_p1 = scmp.lt.u32.totalorder %s4846_s1, %s5563_s5 }
  0x7c   : > { %p4849_p9 = pnand %p4847_p7, %p5148_p8 }
  0x7e   : > { %p4850_p4 = pneg %p4849_p9 }
  0x80   : > { %p4855_p3 = pnand %p4853_p1, %p4850_p4 }
  0x82   : > { %4858 = shalt.err (!%p4855_p3)
}
  0x83   : > { %s4859_s19 = scalar_lea.vmem %s392_s29, 4096  ;;  %p4867_p13 = scmp.lt.s32.totalorder %s392_s29, %s392_s29 }
  0x84   : > { %p4860_p10 = scmp.ne.s32.totalorder %s392_s29, %s4859_s19  ;;  %p4868_p0 = scmp.lt.s32.totalorder %s4859_s19, %s4859_s19 }
  0x86   : > { %p4862_p11 = pnand %p4860_p10, %p5148_p8  ;;  %p4869_p2 = por %p4868_p0, %p4867_p13 }
  0x88   : > { %p4863_p12 = pneg %p4862_p11 }
  0x8a   : > { %p4870_p5 = pnand %p4869_p2, %p4863_p12 }
  0x8c   : > { %4873 = shalt.err (!%p4870_p5)
}
  0x8d   : > { %s5021_s13 = smov 128   ;;  %s5022_s21 = smov 8  }
  0x8e   : > { %4266 = dma.hbm_to_vmem [thread:$0]  (!%p5134_p6), %s5563_s5, 4096, %s392_s29, [#allocation9], %s5021_s13, %s5021_s13, %s5022_s21  }
  0x8f   : > { %s5023_s20 = smov [#allocation13]   ;;  %s4874_s8 = scalar_lea.hbm %s5569_s11, 16384 }
  0x90   : > { %s429_s3 = sshll.u32 %s5023_s20, 4  ;;  %p4875_p7 = scmp.ne.s32.totalorder %s5569_s11, %s4874_s8  ;;  %s430_s3 = int_to_ptr.vmem [resolvable:$true] %s429_s3 }
  0x91   : > { %p4881_p1 = scmp.lt.u32.totalorder %s4874_s8, %s5569_s11 }
  0x92   : > { %p4877_p9 = pnand %p4875_p7, %p5148_p8 }
  0x94   : > { %p4878_p4 = pneg %p4877_p9 }
  0x96   : > { %p4883_p3 = pnand %p4881_p1, %p4878_p4 }
  0x98   : > { %4886 = shalt.err (!%p4883_p3)
}
  0x99   : > { %s4887_s29 = scalar_lea.vmem %s430_s3, 16384  ;;  %p4895_p13 = scmp.lt.s32.totalorder %s430_s3, %s430_s3 }
  0x9a   : > { %p4888_p10 = scmp.ne.s32.totalorder %s430_s3, %s4887_s29  ;;  %p4896_p0 = scmp.lt.s32.totalorder %s4887_s29, %s4887_s29 }
  0x9c   : > { %p4890_p11 = pnand %p4888_p10, %p5148_p8  ;;  %p4897_p2 = por %p4896_p0, %p4895_p13 }
  0x9e   : > { %p4891_p12 = pneg %p4890_p11 }
  0xa0   : > { %p4898_p5 = pnand %p4897_p2, %p4891_p12 }
  0xa2   : > { %4901 = shalt.err (!%p4898_p5)
}
  0xa3   : > { %4272 = dma.hbm_to_vmem [thread:$0]  (!%p5134_p6), %s5569_s11, 16384, %s430_s3, [#allocation12], %s5021_s13, %s5021_s13, %s5022_s21  }
  0xa4   : > { %s3812_s16 = sadd.s32 4294967294, %s5010_s28   ;;  %s5266_s18 = sadd.s32 1, %s5010_s28  }
  0xa5   : > { %s36_s30 = ssub.s32 %s5010_s28, %s5266_s18  ;;  %s39_s17 = sadd.s32 1, %s5006_s27 }
  0xa6   : > { %p37_p8 = scmp.eq.s32.totalorder %s36_s30, 0  ;;  %p46_p7 = scmp.ne.s32.totalorder %s5006_s27, %s5002_s26 }
  0xa7   : > { %p47_p9 = scmp.eq.s32.totalorder %s5010_s28, 0  ;;  %p52_p4 = scmp.ne.s32.totalorder %s5002_s26, %s4998_s25 }
  0xa8   : > { %s5277_s20 = scalar_select %p37_p8, %s5006_s27, %s39_s17  }
  0xa9   : > { %p5279_p1 = por %p47_p9, %p46_p7  ;;  %p5589_p3 = scmp.eq.s32.totalorder %s5118_s14, 0 }
  0xaa   : > { %p328_p10 = scmp.eq.s32.totalorder %s5118_s14, 1  ;;  %p334_p11 = scmp.eq.s32.totalorder %s3812_s16, 1 }
  0xab   : > { %p5285_p6 = por %p5589_p3, %p52_p4  ;;  %p4287_p12 = scmp.lt.s32.totalorder %s5010_s28, 2 }
  0xac   : > { %s446_s21 = sand.u32 1, %s5006_s27   ;;  %p5292_p13 = por %p328_p10, %p46_p7 }
  0xad   : > { %p5296_p0 = por %p334_p11, %p52_p4  ;;  %s3821_s8 = sshll.u32 %s446_s21, 4 }
  0xae   : > { %s5591_s3 = scalar_select %p5292_p13, 1, 0 }
  0xaf   : > { %s5592_s7 = scalar_select %p5296_p0, 1, 0 }
  0xb0   : > { %s4224_s1 = sshll.u32 %s5010_s28, 8  ;;  %s450_s29 = scalar_lea.vmem [#allocation2], %s3821_s8 }
  0xb1   : > { %s5304_s24 = scalar_lea.hbm %s5558_s0, %s4224_s1  ;;  %s458_s23 = sshll.u32 %s450_s29, 4  ;;  %s5306_s23 = int_to_ptr.vmem [resolvable:$true] %s458_s23 }
  0xb2   : > { %p5310_p2 = pnand %p4287_p12, %p5279_p1  ;;  %s447_s16 = scalar_lea.sflag [#allocation3], %s446_s21 }
  0xb3   : > { %s4902_s30 = scalar_lea.hbm %s5304_s24, 256  ;;  %s4907_s1 = scalar_lea.hbm %s5558_s0, 512 }
  0xb4   : > { %p4903_p5 = scmp.ne.s32.totalorder %s5304_s24, %s4902_s30  ;;  %p4904_p8 = pneg %p5310_p2 }
  0xb5   : > { %p4908_p4 = scmp.lt.u32.totalorder %s5304_s24, %s5558_s0  ;;  %p4909_p1 = scmp.lt.u32.totalorder %s4907_s1, %s4902_s30 }
  0xb6   : > { %p4905_p7 = pnand %p4904_p8, %p4903_p5  ;;  %p4911_p10 = scmp.lt.u32.totalorder %s4902_s30, %s5304_s24 }
  0xb7   : > { %p4910_p3 = por %p4909_p1, %p4908_p4 }
  0xb8   : > { %p4906_p9 = pneg %p4905_p7 }
  0xb9   : > { %p4912_p11 = por %p4911_p10, %p4910_p3 }
  0xbb   : > { %p4913_p12 = pnand %p4912_p11, %p4906_p9 }
  0xbd   : > { %4916 = shalt.err (!%p4913_p12)
}
  0xbe   : > { %s4917_s21 = scalar_lea.vmem %s5306_s23, 256  ;;  %s5024_s22 = smov [#allocation2]  }
  0xbf   : > { %p4918_p5 = scmp.ne.s32.totalorder %s5306_s23, %s4917_s21  ;;  %s4922_s29 = sshll.u32 %s5024_s22, 4  ;;  %s4923_s29 = int_to_ptr.vmem [resolvable:$false] %s4922_s29 }
  0xc0   : > { %s4924_s17 = scalar_lea.vmem %s4923_s29, 512  ;;  %p4925_p13 = scmp.lt.s32.totalorder %s5306_s23, %s4923_s29 }
  0xc1   : > { %p4920_p7 = pnand %p4918_p5, %p4904_p8  ;;  %p4926_p4 = scmp.lt.s32.totalorder %s4924_s17, %s4917_s21 }
  0xc3   : > { %p4921_p0 = pneg %p4920_p7  ;;  %p4927_p1 = por %p4926_p4, %p4925_p13 }
  0xc5   : > { %p4928_p3 = pnand %p4927_p1, %p4921_p0 }
  0xc7   : > { %4931 = shalt.err (!%p4928_p3)
}
  0xc8   : > { %4276 = dma.hbm_to_vmem [thread:$0]  (!%p5310_p2), %s5304_s24, 256, %s5306_s23, %s447_s16  }
  0xc9   : > { %p5594_p9 = scmp.ne.s32.totalorder %s5583_s15, 0 }
  0xca   : > { %s5342_s30 = sand.u32 (!%p5594_p9), 1, %s5002_s26  }
  0xcb   : > { %467 = sbr.rel (%p5594_p9) target bundleno = 2562 (0xa02), region = 72  ;;  %s3825_s8 = sshll.u32 (!%p5594_p9), %s5342_s30, 4 }
  0xcc   : > { %s470_s1 = scalar_lea.sflag (!%p5594_p9), [#allocation3], %s5342_s30  ;;  %s5348_s12 = scalar_lea.vmem (!%p5594_p9), [#allocation2], %s3825_s8 }
  0xd2   : > { %4977 = dma.done.wait (%p5285_p6), %s470_s1, 256  }
  0xd3   : > { %4979 = vsyncadd (%p5285_p6), %s470_s1, 4294967040  ;;  %p5595_p13 = scmp.eq.s32.totalorder %s5118_s14, 0 }
  0xd5   : > { %4981 = dma.done.wait (%p5595_p13), [#allocation6], 64   ;;  %p5596_p0 = pmov %p5595_p13 }
  0xd7   : > { %4983 = vsyncadd (%p5596_p0), [#allocation6], 4294967232  ;;  %p5597_p2 = pmov %p5596_p0 }
  0xd8   : > { %p5598_p8 = pmov %p5596_p0 }
  0xd9   : > { %4985 = dma.done.wait (%p5597_p2), [#allocation9], 16384  }
  0xda   : > { %4987 = vsyncadd (%p5598_p8), [#allocation9], 4294950912  ;;  %p5599_p10 = pmov %p5596_p0 }
  0xdb   : > { %p5600_p11 = pmov %p5596_p0 }
  0xdc   : > { %4989 = dma.done.wait (%p5599_p10), [#allocation12], 32768  }
  0xdd   : > { %4991 = vsyncadd (%p5600_p11), [#allocation12], 4294934528  ;;  %v5367_v0 = vld [vmem:[%s5348_s12] sm:$0xff]  ;;  %v5370_v1 = vld [vmem:[%s5348_s12 + $0x8] sm:$0xff]  ;;  %vm1389_vm0 = vcmask 1043456   ;;  %vm1371_vm2 = vcmask 64512  }
  0xde   : > { %v545_v2 = vadd.f32 %v5370_v1, %v5367_v0  ;;  %v4340_v3 = vld [vmem:[#allocation8 + $0x4] ss:$24 sps:$4 sm:$0xff]   ;;  %v4342_v4 = vld [vmem:[#allocation8] ss:$24 sps:$4 sm:$0xff]   ;;  %v4346_v7 = vld [vmem:[#allocation8 + $0x34] ss:$24 sps:$4 sm:$0xff]  }
  0xdf   : > { %v4343_v5 = vld [vmem:[#allocation8 + $0xc] ss:$24 sps:$4 sm:$0xff]   ;;  %v4345_v6 = vld [vmem:[#allocation8 + $0x8] ss:$24 sps:$4 sm:$0xff]   ;;  %1198 = vmatprep.subr.bf16.mxu0 %v4340_v3  ;;  %v4349_v8 = vld [vmem:[#allocation8 + $0x3c] ss:$24 sps:$4 sm:$0xff]  }
  0xe0   : > { %546 = vadd.xlane.f32.xlu0 %v545_v2  ;;  %1239 = vmatprep.subr.bf16.mxu1 %v4343_v5  ;;  %v4348_v9 = vld [vmem:[#allocation8 + $0x30] ss:$24 sps:$4 sm:$0xff]   ;;  %v4352_v11 = vld [vmem:[#allocation8 + $0x64] ss:$24 sps:$4 sm:$0xff]   ;;  %v4354_v13 = vld [vmem:[#allocation8 + $0x60] ss:$24 sps:$4 sm:$0xff]  }
  0xe1   : > { %1199 = vmatpush1.bf16.msra.mxu0 %v4342_v4  ;;  %1240 = vmatpush1.bf16.msra.mxu1 %v4345_v6  ;;  %v4351_v10 = vld [vmem:[#allocation8 + $0x38] ss:$24 sps:$4 sm:$0xff]   ;;  %v4355_v12 = vld [vmem:[#allocation8 + $0x6c] ss:$24 sps:$4 sm:$0xff]   ;;  %v4357_v14 = vld [vmem:[#allocation8 + $0x68] ss:$24 sps:$4 sm:$0xff]  }
  0xe2   : > { %1200 = vmatprep.subr.bf16.mxu0 %v4346_v7  ;;  %1241 = vmatprep.subr.bf16.mxu1 %v4349_v8  ;;  %v4358_v15 = vld [vmem:[#allocation8 + $0x94] ss:$24 sps:$4 sm:$0xff]   ;;  %v4360_v17 = vld [vmem:[#allocation8 + $0x90] ss:$24 sps:$4 sm:$0xff]   ;;  %v4364_v19 = vld [vmem:[#allocation8 + $0xc4] ss:$24 sps:$4 sm:$0xff]  }
  0xe3   : > { %v4361_v16 = vld [vmem:[#allocation8 + $0x9c] ss:$24 sps:$4 sm:$0xff]   ;;  %v4363_v18 = vld [vmem:[#allocation8 + $0x98] ss:$24 sps:$4 sm:$0xff]   ;;  %v4367_v20 = vld [vmem:[#allocation8 + $0xcc] ss:$24 sps:$4 sm:$0xff]  }
  0xe4   : > { %v4366_v21 = vld [vmem:[#allocation8 + $0xc0] ss:$24 sps:$4 sm:$0xff]   ;;  %v4370_v23 = vld [vmem:[#allocation8 + $0xf4] ss:$24 sps:$4 sm:$0xff]   ;;  %v4372_v25 = vld [vmem:[#allocation8 + $0xf0] ss:$24 sps:$4 sm:$0xff]  }
  0xe5   : > { %1201 = vmatpush1.bf16.msra.mxu0 %v4348_v9  ;;  %1242 = vmatpush1.bf16.msra.mxu1 %v4351_v10  ;;  %v4369_v22 = vld [vmem:[#allocation8 + $0xc8] ss:$24 sps:$4 sm:$0xff]   ;;  %v4373_v24 = vld [vmem:[#allocation8 + $0xfc] ss:$24 sps:$4 sm:$0xff]   ;;  %v4375_v26 = vld [vmem:[#allocation8 + $0xf8] ss:$24 sps:$4 sm:$0xff]  }
  0xe6   : > { %1202 = vmatprep.subr.bf16.mxu0 %v4352_v11  ;;  %1243 = vmatprep.subr.bf16.mxu1 %v4355_v12  ;;  %v4376_v27 = vld [vmem:[#allocation8 + $0x124] ss:$24 sps:$4 sm:$0xff]   ;;  %v4378_v29 = vld [vmem:[#allocation8 + $0x120] ss:$24 sps:$4 sm:$0xff]   ;;  %v4382_v31 = vld [vmem:[#allocation8 + $0x154] ss:$24 sps:$4 sm:$0xff]  }
  0xe7   : > { %v4379_v28 = vld [vmem:[#allocation8 + $0x12c] ss:$24 sps:$4 sm:$0xff]   ;;  %v4381_v30 = vld [vmem:[#allocation8 + $0x128] ss:$24 sps:$4 sm:$0xff]   ;;  %v4385_v32 = vld [vmem:[#allocation8 + $0x15c] ss:$24 sps:$4 sm:$0xff]  }
  0xe8   : > { %v4384_v33 = vld [vmem:[#allocation8 + $0x150] ss:$24 sps:$4 sm:$0xff]   ;;  %v4388_v35 = vld [vmem:[#allocation8 + $0x184] ss:$24 sps:$4 sm:$0xff]   ;;  %v4390_v37 = vld [vmem:[#allocation8 + $0x180] ss:$24 sps:$4 sm:$0xff]  }
  0xe9   : > { %1203 = vmatpush1.bf16.msra.mxu0 %v4354_v13  ;;  %1244 = vmatpush1.bf16.msra.mxu1 %v4357_v14  ;;  %v4387_v34 = vld [vmem:[#allocation8 + $0x158] ss:$24 sps:$4 sm:$0xff]   ;;  %v4391_v36 = vld [vmem:[#allocation8 + $0x18c] ss:$24 sps:$4 sm:$0xff]   ;;  %v4393_v38 = vld [vmem:[#allocation8 + $0x188] ss:$24 sps:$4 sm:$0xff]   ;;  %v563_v13 = vlaneseq }
  0xea   : > { %1204 = vmatprep.subr.bf16.mxu0 %v4358_v15  ;;  %1245 = vmatprep.subr.bf16.mxu1 %v4361_v16  ;;  %v4394_v39 = vld [vmem:[#allocation8 + $0x1b4] ss:$24 sps:$4 sm:$0xff]   ;;  %v4396_v41 = vld [vmem:[#allocation8 + $0x1b0] ss:$24 sps:$4 sm:$0xff]   ;;  %v4400_v43 = vld [vmem:[#allocation8 + $0x1e4] ss:$24 sps:$4 sm:$0xff]  }
  0xeb   : > { %v4397_v40 = vld [vmem:[#allocation8 + $0x1bc] ss:$24 sps:$4 sm:$0xff]   ;;  %v4399_v42 = vld [vmem:[#allocation8 + $0x1b8] ss:$24 sps:$4 sm:$0xff]   ;;  %v4403_v52 = vld [vmem:[#allocation8 + $0x1ec] ss:$24 sps:$4 sm:$0xff]  }
  0xec   : > { %v4402_v51 = vld [vmem:[#allocation8 + $0x1e0] ss:$24 sps:$4 sm:$0xff]   ;;  %v4406_v54 = vld [vmem:[#allocation8 + $0x214] ss:$24 sps:$4 sm:$0xff]   ;;  %v4408_v55 = vld [vmem:[#allocation8 + $0x210] ss:$24 sps:$4 sm:$0xff]  }
  0xed   : > { %1205 = vmatpush1.bf16.msra.mxu0 %v4360_v17  ;;  %1246 = vmatpush1.bf16.msra.mxu1 %v4363_v18  ;;  %v4405_v53 = vld [vmem:[#allocation8 + $0x1e8] ss:$24 sps:$4 sm:$0xff]   ;;  %v4409_v56 = vld [vmem:[#allocation8 + $0x21c] ss:$24 sps:$4 sm:$0xff]   ;;  %v4411_v57 = vld [vmem:[#allocation8 + $0x218] ss:$24 sps:$4 sm:$0xff]  }
  0xee   : > { %1206 = vmatprep.subr.bf16.mxu0 %v4364_v19  ;;  %1247 = vmatprep.subr.bf16.mxu1 %v4367_v20  ;;  %v4412_v58 = vld [vmem:[#allocation8 + $0x244] ss:$24 sps:$4 sm:$0xff]   ;;  %v4414_v59 = vld [vmem:[#allocation8 + $0x240] ss:$24 sps:$4 sm:$0xff]   ;;  %v4418_v62 = vld [vmem:[#allocation8 + $0x274] ss:$24 sps:$4 sm:$0xff]  }
  0xef   : > { %v4415_v60 = vld [vmem:[#allocation8 + $0x24c] ss:$24 sps:$4 sm:$0xff]   ;;  %v4417_v61 = vld [vmem:[#allocation8 + $0x248] ss:$24 sps:$4 sm:$0xff]   ;;  %v4421_v63 = vld [vmem:[#allocation8 + $0x27c] ss:$24 sps:$4 sm:$0xff]  }
  0xf0   : > { %v4424_v2 = vld [vmem:[#allocation8 + $0x2a4] ss:$24 sps:$4 sm:$0xff]   ;;  %v4426_v4 = vld [vmem:[#allocation8 + $0x2a0] ss:$24 sps:$4 sm:$0xff]   ;;  %v4430_v6 = vld [vmem:[#allocation8 + $0x2d4] ss:$24 sps:$4 sm:$0xff]  }
  0xf1   : > { %1207 = vmatpush1.bf16.msra.mxu0 %v4366_v21  ;;  %1248 = vmatpush1.bf16.msra.mxu1 %v4369_v22  ;;  %v4427_v3 = vld [vmem:[#allocation8 + $0x2ac] ss:$24 sps:$4 sm:$0xff]   ;;  %v4429_v5 = vld [vmem:[#allocation8 + $0x2a8] ss:$24 sps:$4 sm:$0xff]   ;;  %v4433_v7 = vld [vmem:[#allocation8 + $0x2dc] ss:$24 sps:$4 sm:$0xff]  }
  0xf2   : > { %1208 = vmatprep.subr.bf16.mxu0 %v4370_v23  ;;  %1249 = vmatprep.subr.bf16.mxu1 %v4373_v24  ;;  %v4432_v8 = vld [vmem:[#allocation8 + $0x2d0] ss:$24 sps:$4 sm:$0xff]   ;;  %v4438_v10 = vld [vmem:[#allocation8 + $0x14] ss:$24 sps:$4 sm:$0xff]   ;;  %v5385_v15 = vshrl.u32 %v563_v13, 7  ;;  %s5601_s10 = sld [smem:[#allocation22_spill]] }
  0xf3   : > { %v4435_v9 = vld [vmem:[#allocation8 + $0x2d8] ss:$24 sps:$4 sm:$0xff]   ;;  %v543_v18 = vld [vmem:[#allocation5] sm:$0x3]  ;;  %v544_v19 = vld [vmem:[#allocation7] sm:$0x3] }
  0xf4   : > { %v5388_v16 = vsub.s32 1, %v5385_v15  ;;  %v5391_v17 = vsub.s32 0, %v5385_v15  ;;  %s5602_s29 = sld [smem:[#allocation23_spill]]  ;;  %s5604_s24 = sld [smem:[#allocation25_spill]] }
  0xf5   : > { %1209 = vmatpush1.bf16.msra.mxu0 %v4372_v25  ;;  %1250 = vmatpush1.bf16.msra.mxu1 %v4375_v26  ;;  %s4225_s23 = sshll.u32 %s5118_s14, 8  ;;  %s539_s19 = scalar_lea.vmem [#allocation14], %s3825_s8 }
  0xf6   : > { %1210 = vmatprep.subr.bf16.mxu0 %v4376_v27  ;;  %1251 = vmatprep.subr.bf16.mxu1 %v4379_v28  ;;  %v570_v20 = vrot.slane %v543_v18, %v5388_v16  ;;  %v566_v21 = vrot.slane %v543_v18, %v5391_v17  ;;  %v583_v24 = vrot.slane %v544_v19, %v5388_v16  ;;  %s3685_s16 = sshll.u32 %s539_s19, 4  ;;  %s5605_s22 = sld [smem:[#allocation26_spill]]  ;;  %s5516_s16 = int_to_ptr.vmem [resolvable:$true] %s3685_s16 }
  0xf7   : > { %v579_v26 = vrot.slane %v544_v19, %v5391_v17  ;;  %s3671_s14 = scalar_lea.sflag [#allocation4], %s5342_s30  ;;  %s4932_s8 = scalar_lea.vmem %s5516_s16, 256 }
  0xf8   : > { %p4933_p6 = scmp.ne.s32.totalorder %s5516_s16, %s4932_s8  ;;  %p5606_p12 = scmp.ne.s32.totalorder %s5591_s3, 0 }
  0xf9   : > { %1211 = vmatpush1.bf16.msra.mxu0 %v4378_v29  ;;  %1252 = vmatpush1.bf16.msra.mxu1 %v4381_v30  ;;  %s5026_s17 = smov [#allocation14]  }
  0xfa   : > { %1212 = vmatprep.subr.bf16.mxu0 %v4382_v31  ;;  %1253 = vmatprep.subr.bf16.mxu1 %v4385_v32  ;;  %v4436_v32 = vld [vmem:[#allocation8 + $0x10] ss:$24 sps:$4 sm:$0xff]   ;;  %p4934_p5 = pnand %p4933_p6, %p5606_p12  ;;  %s4936_s1 = sshll.u32 %s5026_s17, 4  ;;  %s4937_s1 = int_to_ptr.vmem [resolvable:$false] %s4936_s1 }
  0xfb   : > { %p4939_p4 = scmp.lt.s32.totalorder %s5516_s16, %s4937_s1 }
  0xfc   : > { %p4935_p7 = pneg %p4934_p5 }
  0xfd   : > { %1213 = vmatpush1.bf16.msra.mxu0 %v4384_v33  ;;  %1254 = vmatpush1.bf16.msra.mxu1 %v4387_v34  ;;  %v4441_v34 = vld [vmem:[#allocation8 + $0x44] ss:$24 sps:$4 sm:$0xff]  }
  0xfe   : > { %1214 = vmatprep.subr.bf16.mxu0 %v4388_v35  ;;  %1255 = vmatprep.subr.bf16.mxu1 %v4391_v36  ;;  %v4439_v35 = vld [vmem:[#allocation8 + $0x40] ss:$24 sps:$4 sm:$0xff]   ;;  %v4444_v36 = vld [vmem:[#allocation8 + $0x74] ss:$24 sps:$4 sm:$0xff]  }
 0x101   : > { %1215 = vmatpush1.bf16.msra.mxu0 %v4390_v37  ;;  %1256 = vmatpush1.bf16.msra.mxu1 %v4393_v38  ;;  %v4442_v37 = vld [vmem:[#allocation8 + $0x70] ss:$24 sps:$4 sm:$0xff]   ;;  %v4447_v38 = vld [vmem:[#allocation8 + $0xa4] ss:$24 sps:$4 sm:$0xff]  }
 0x102   : > { %1216 = vmatprep.subr.bf16.mxu0 %v4394_v39  ;;  %1257 = vmatprep.subr.bf16.mxu1 %v4397_v40  ;;  %v4445_v39 = vld [vmem:[#allocation8 + $0xa0] ss:$24 sps:$4 sm:$0xff]   ;;  %v4450_v40 = vld [vmem:[#allocation8 + $0xd4] ss:$24 sps:$4 sm:$0xff]  }
 0x105   : > { %1217 = vmatpush1.bf16.msra.mxu0 %v4396_v41  ;;  %1258 = vmatpush1.bf16.msra.mxu1 %v4399_v42  ;;  %v4448_v41 = vld [vmem:[#allocation8 + $0xd0] ss:$24 sps:$4 sm:$0xff]   ;;  %v4453_v42 = vld [vmem:[#allocation8 + $0x104] ss:$24 sps:$4 sm:$0xff]  }
 0x106   : > { %1218 = vmatprep.subr.bf16.mxu0 %v4400_v43  ;;  %1259 = vmatprep.subr.bf16.mxu1 %v4403_v52  ;;  %v4451_v43 = vld [vmem:[#allocation8 + $0x100] ss:$24 sps:$4 sm:$0xff]   ;;  %v4468_v52 = vld [vmem:[#allocation8 + $0x1f4] ss:$24 sps:$4 sm:$0xff]  }
 0x109   : > { %1219 = vmatpush1.bf16.msra.mxu0 %v4402_v51  ;;  %1260 = vmatpush1.bf16.msra.mxu1 %v4405_v53  ;;  %v4463_v51 = vld [vmem:[#allocation8 + $0x1c0] ss:$24 sps:$4 sm:$0xff]   ;;  %v4466_v53 = vld [vmem:[#allocation8 + $0x1f0] ss:$24 sps:$4 sm:$0xff]  }
 0x10a   : > { %1220 = vmatprep.subr.bf16.mxu0 %v4406_v54  ;;  %1261 = vmatprep.subr.bf16.mxu1 %v4409_v56  ;;  %v4471_v54 = vld [vmem:[#allocation8 + $0x224] ss:$24 sps:$4 sm:$0xff]   ;;  %v4474_v56 = vld [vmem:[#allocation8 + $0x254] ss:$24 sps:$4 sm:$0xff]  }
 0x10d   : > { %1221 = vmatpush1.bf16.msra.mxu0 %v4408_v55  ;;  %1262 = vmatpush1.bf16.msra.mxu1 %v4411_v57  ;;  %v4469_v55 = vld [vmem:[#allocation8 + $0x220] ss:$24 sps:$4 sm:$0xff]   ;;  %v4472_v57 = vld [vmem:[#allocation8 + $0x250] ss:$24 sps:$4 sm:$0xff]  }
 0x10e   : > { %1222 = vmatprep.subr.bf16.mxu0 %v4412_v58  ;;  %1263 = vmatprep.subr.bf16.mxu1 %v4415_v60  ;;  %v4477_v58 = vld [vmem:[#allocation8 + $0x284] ss:$24 sps:$4 sm:$0xff]   ;;  %v4480_v60 = vld [vmem:[#allocation8 + $0x2b4] ss:$24 sps:$4 sm:$0xff]  }
 0x111   : > { %1223 = vmatpush1.bf16.msra.mxu0 %v4414_v59  ;;  %1264 = vmatpush1.bf16.msra.mxu1 %v4417_v61  ;;  %v4475_v59 = vld [vmem:[#allocation8 + $0x280] ss:$24 sps:$4 sm:$0xff]   ;;  %v4478_v61 = vld [vmem:[#allocation8 + $0x2b0] ss:$24 sps:$4 sm:$0xff]  }
 0x112   : > { %1224 = vmatprep.subr.bf16.mxu0 %v4418_v62  ;;  %1265 = vmatprep.subr.bf16.mxu1 %v4421_v63  ;;  %v4483_v62 = vld [vmem:[#allocation8 + $0x2e4] ss:$24 sps:$4 sm:$0xff]   ;;  %v4481_v63 = vld [vmem:[#allocation8 + $0x2e0] ss:$24 sps:$4 sm:$0xff]  }
 0x16d   : > { %v547_v44 = vpop.xlane.xlu0 %546 }
 0x16e   : > { %v549_v45 = vmul.f32 0.00390625, %v547_v44  ;;  %v4456_v44 = vld [vmem:[#allocation8 + $0x134] ss:$24 sps:$4 sm:$0xff]  }
 0x170   : > { %v5375_v46 = vsub.f32 %v5367_v0, %v549_v45  ;;  %v5378_v47 = vsub.f32 %v5370_v1, %v549_v45  ;;  %v4420_v0 = vld [vmem:[#allocation8 + $0x270] ss:$24 sps:$4 sm:$0xff]  }
 0x171   : > { %v4423_v1 = vld [vmem:[#allocation8 + $0x278] ss:$24 sps:$4 sm:$0xff]   ;;  %1225 = vmatpush1.bf16.msra.mxu0 %v4420_v0  ;;  %v698_v0 = vsub.s32 2, %v5385_v15 }
 0x172   : > { %v552_v48 = vmul.f32 %v5375_v46, %v5375_v46  ;;  %v553_v49 = vmul.f32 %v5378_v47, %v5378_v47  ;;  %1266 = vmatpush1.bf16.msra.mxu1 %v4423_v1  ;;  %1226 = vmatprep.subr.bf16.mxu0 %v4424_v2  ;;  %v4454_v45 = vld [vmem:[#allocation8 + $0x130] ss:$24 sps:$4 sm:$0xff]   ;;  %v686_v1 = vld [vmem:[%s5562_s4] sm:$0x3f]  ;;  %v702_v2 = vsub.s32 3, %v5385_v15 }
 0x173   : > { %1267 = vmatprep.subr.bf16.mxu1 %v4427_v3  ;;  %v699_v3 = vrot.slane %v686_v1, %v698_v0 }
 0x174   : > { %v554_v50 = vadd.f32 %v553_v49, %v552_v48  ;;  %v4462_v48 = vld [vmem:[#allocation8 + $0x194] ss:$24 sps:$4 sm:$0xff]   ;;  %v4460_v49 = vld [vmem:[#allocation8 + $0x190] ss:$24 sps:$4 sm:$0xff]  }
 0x175   : > { %1227 = vmatpush1.bf16.msra.mxu0 %v4426_v4  ;;  %v695_v4 = vrot.slane %v686_v1, %v5388_v16 }
 0x176   : > { %555 = vadd.xlane.f32.xlu0 %v554_v50  ;;  %1268 = vmatpush1.bf16.msra.mxu1 %v4429_v5  ;;  %v4465_v50 = vld [vmem:[#allocation8 + $0x1c4] ss:$24 sps:$4 sm:$0xff]   ;;  %v703_v5 = vrot.slane %v686_v1, %v702_v2 }
 0x177   : > { %1228 = vmatprep.subr.bf16.mxu0 %v4430_v6  ;;  %1269 = vmatprep.subr.bf16.mxu1 %v4433_v7 }
 0x179   : > { %1229 = vmatpush1.bf16.msra.mxu0 %v4432_v8 }
 0x17a   : > { %1270 = vmatpush1.bf16.msra.mxu1 %v4435_v9  ;;  %1280 = vmatprep.subr.bf16.mxu0 %v4438_v10 }
 0x203   : > { %v556_v11 = vpop.xlane.xlu0 %555 }
 0x204   : > { %v557_v12 = vmul.f32 0.00390625, %v556_v11 }
 0x206   : > { %v558_v14 = vadd.f32 1e-05, %v557_v12 }
 0x208   : > { %4724 = vrsqrt.f32 %v558_v14 }
 0x212   : > { %v4725_v22 = vpop.eup %4724 }
 0x213   : > { %v561_v23 = vmul.f32 %v4725_v22, %v5378_v47  ;;  %v560_v25 = vmul.f32 %v4725_v22, %v5375_v46  ;;  %v4459_v46 = vld [vmem:[#allocation8 + $0x164] ss:$24 sps:$4 sm:$0xff]   ;;  %v4457_v47 = vld [vmem:[#allocation8 + $0x160] ss:$24 sps:$4 sm:$0xff]  }
 0x215   : > { %v574_v27 = vmul.f32 %v570_v20, %v561_v23  ;;  %v573_v28 = vmul.f32 %v566_v21, %v560_v25  ;;  %v691_v21 = vrot.slane %v686_v1, %v5391_v17 }
 0x217   : > { %v587_v29 = vadd.f32 %v583_v24, %v574_v27  ;;  %v586_v30 = vadd.f32 %v579_v26, %v573_v28  ;;  %v706_v27 = vsub.s32 4, %v5385_v15  ;;  %v710_v28 = vsub.s32 5, %v5385_v15 }
 0x219   : > { %v589_v31 = vpack.c.bf16 %v587_v29, %v587_v29  ;;  %v5399_v33 = vpack.c.bf16 %v586_v30, %v586_v30  ;;  %v707_v29 = vrot.slane %v686_v1, %v706_v27  ;;  %v711_v30 = vrot.slane %v686_v1, %v710_v28  ;;  %v4498_v1 = vld [vmem:[#allocation10 + $0x44] ss:$8 sps:$4 sm:$0xff]  }
 0x21b   : > { %1230 = vmatprep.mubr.bf16.mxu0 %v589_v31  ;;  %1271 = vmatprep.mubr.bf16.mxu1 %v589_v31 }
 0x21c   : > { %1231 = vmatmul.mubr.bf16.vlgmr.msra.gmra.mrb[0].mxu0 %v5399_v33  ;;  %1272 = vmatmul.mubr.bf16.vlgmr.msra.gmra.mrb[0].mxu1 %v5399_v33 }
 0x21d   : > { %1281 = vmatpush1.bf16.msra.mxu0 %v4436_v32  ;;  %1312 = vmatprep.mubr.bf16.mxu0 %v589_v31 }
 0x21e   : > { %1282 = vmatprep.subr.bf16.mxu0 %v4441_v34 }
 0x221   : > { %1283 = vmatpush1.bf16.msra.mxu0 %v4439_v35 }
 0x222   : > { %1284 = vmatprep.subr.bf16.mxu0 %v4444_v36 }
 0x225   : > { %1285 = vmatpush1.bf16.msra.mxu0 %v4442_v37 }
 0x226   : > { %1286 = vmatprep.subr.bf16.mxu0 %v4447_v38 }
 0x229   : > { %1287 = vmatpush1.bf16.msra.mxu0 %v4445_v39 }
 0x22a   : > { %1288 = vmatprep.subr.bf16.mxu0 %v4450_v40  ;;  %v1368_v40 = vand.u32 127, %v563_v13  ;;  %v5025_v13 = vmov 0  }
 0x22b   : > { %1428 = vmatprep.mubr.bf16.mxu1 %v5025_v13 }
 0x22c   : > { %vm1369_vm1 = vcmp.ge.s32.totalorder %v5385_v15, %v1368_v40 }
 0x22d   : > { %1289 = vmatpush1.bf16.msra.mxu0 %v4448_v41 }
 0x22e   : > { %1290 = vmatprep.subr.bf16.mxu0 %v4453_v42 }
 0x231   : > { %1291 = vmatpush1.bf16.msra.mxu0 %v4451_v43 }
 0x232   : > { %1292 = vmatprep.subr.bf16.mxu0 %v4456_v44 }
 0x235   : > { %1293 = vmatpush1.bf16.msra.mxu0 %v4454_v45 }
 0x236   : > { %1294 = vmatprep.subr.bf16.mxu0 %v4459_v46 }
 0x239   : > { %1295 = vmatpush1.bf16.msra.mxu0 %v4457_v47 }
 0x23a   : > { %1296 = vmatprep.subr.bf16.mxu0 %v4462_v48 }
 0x23d   : > { %1297 = vmatpush1.bf16.msra.mxu0 %v4460_v49 }
 0x23e   : > { %1298 = vmatprep.subr.bf16.mxu0 %v4465_v50 }
 0x241   : > { %1299 = vmatpush1.bf16.msra.mxu0 %v4463_v51 }
 0x242   : > { %1300 = vmatprep.subr.bf16.mxu0 %v4468_v52  ;;  %v4486_v52 = vld [vmem:[#allocation10 + $0x4] ss:$8 sps:$4 sm:$0xff]  }
 0x245   : > { %1301 = vmatpush1.bf16.msra.mxu0 %v4466_v53 }
 0x246   : > { %1302 = vmatprep.subr.bf16.mxu0 %v4471_v54 }
 0x249   : > { %1303 = vmatpush1.bf16.msra.mxu0 %v4469_v55 }
 0x24a   : > { %1304 = vmatprep.subr.bf16.mxu0 %v4474_v56  ;;  %v4484_v56 = vld [vmem:[#allocation10] ss:$8 sps:$4 sm:$0xff]  }
 0x24d   : > { %1305 = vmatpush1.bf16.msra.mxu0 %v4472_v57 }
 0x24e   : > { %1306 = vmatprep.subr.bf16.mxu0 %v4477_v58  ;;  %v4489_v58 = vld [vmem:[#allocation10 + $0x14] ss:$8 sps:$4 sm:$0xff]  }
 0x251   : > { %1307 = vmatpush1.bf16.msra.mxu0 %v4475_v59  ;;  %v4487_v59 = vld [vmem:[#allocation10 + $0x10] ss:$8 sps:$4 sm:$0xff]  }
 0x252   : > { %1308 = vmatprep.subr.bf16.mxu0 %v4480_v60  ;;  %v4492_v60 = vld [vmem:[#allocation10 + $0x24] ss:$8 sps:$4 sm:$0xff]  }
 0x255   : > { %1309 = vmatpush1.bf16.msra.mxu0 %v4478_v61  ;;  %v4490_v61 = vld [vmem:[#allocation10 + $0x20] ss:$8 sps:$4 sm:$0xff]  }
 0x256   : > { %1310 = vmatprep.subr.bf16.mxu0 %v4483_v62  ;;  %v4495_v62 = vld [vmem:[#allocation10 + $0x34] ss:$8 sps:$4 sm:$0xff]  }
 0x259   : > { %1311 = vmatpush1.bf16.msra.mxu0 %v4481_v63  ;;  %v4493_v63 = vld [vmem:[#allocation10 + $0x30] ss:$8 sps:$4 sm:$0xff]  }
 0x25c   : > { %1313 = vmatmul.mubr.bf16.vlgmr.msra.gmra.mrb[4].mxu0 %v5399_v33 }
 0x2ef   : > { %v1232_v6 = vpop.f32.mrb[0].mxu0  ;;  %v1273_v7 = vpop.f32.mrb[0].mxu1 }
 0x2f0   : > { %v1274_v8 = vadd.f32 %v1273_v7, %v699_v3  ;;  %v1234_v9 = vpop.f32.mrb[1].mxu0  ;;  %v1275_v10 = vpop.f32.mrb[1].mxu1  ;;  %v1233_v25 = vadd.f32 %v1232_v6, %v691_v21  ;;  %v4496_v3 = vld [vmem:[#allocation10 + $0x40] ss:$8 sps:$4 sm:$0xff]   ;;  %v4504_v6 = vld [vmem:[#allocation10 + $0x64] ss:$8 sps:$4 sm:$0xff]  }
 0x2f1   : > { %v1235_v11 = vadd.f32 %v1234_v9, %v695_v4  ;;  %v1276_v12 = vadd.f32 %v1275_v10, %v703_v5  ;;  %v1236_v14 = vpop.f32.mrb[2].mxu0  ;;  %v1277_v18 = vpop.f32.mrb[2].mxu1  ;;  %v4501_v4 = vld [vmem:[#allocation10 + $0x54] ss:$8 sps:$4 sm:$0xff]   ;;  %v4499_v5 = vld [vmem:[#allocation10 + $0x50] ss:$8 sps:$4 sm:$0xff]  }
 0x2f2   : > { %v1237_v19 = vpop.f32.mrb[3].mxu0  ;;  %v1278_v20 = vpop.f32.mrb[3].mxu1  ;;  %v1323_v24 = vpack.c.bf16 %v1274_v8, %v1274_v8  ;;  %v1321_v26 = vpack.c.bf16 %v1233_v25, %v1233_v25  ;;  %v4502_v7 = vld [vmem:[#allocation10 + $0x60] ss:$8 sps:$4 sm:$0xff]   ;;  %v4507_v8 = vld [vmem:[#allocation10 + $0x74] ss:$8 sps:$4 sm:$0xff]  }
 0x2f3   : > { %v1322_v22 = vpack.c.bf16 %v1235_v11, %v1235_v11  ;;  %v1324_v23 = vpack.c.bf16 %v1276_v12, %v1276_v12  ;;  %v4505_v9 = vld [vmem:[#allocation10 + $0x70] ss:$8 sps:$4 sm:$0xff]   ;;  %v4510_v10 = vld [vmem:[#allocation10 + $0x84] ss:$8 sps:$4 sm:$0xff]   ;;  %v4508_v11 = vld [vmem:[#allocation10 + $0x80] ss:$8 sps:$4 sm:$0xff]  }
 0x2f4   : > { %v4513_v12 = vld [vmem:[#allocation10 + $0x94] ss:$8 sps:$4 sm:$0xff]   ;;  %v4511_v14 = vld [vmem:[#allocation10 + $0x90] ss:$8 sps:$4 sm:$0xff]   ;;  %v4516_v18 = vld [vmem:[#allocation10 + $0xa4] ss:$8 sps:$4 sm:$0xff]  }
 0x2f5   : > { %1325 = vmatprep.subr.bf16.mxu0 %v1324_v23  ;;  %1357 = vmatprep.mubr.bf16.mxu0 %v1322_v22  ;;  %v4514_v19 = vld [vmem:[#allocation10 + $0xa0] ss:$8 sps:$4 sm:$0xff]   ;;  %v4519_v20 = vld [vmem:[#allocation10 + $0xb4] ss:$8 sps:$4 sm:$0xff]   ;;  %v4517_v21 = vld [vmem:[#allocation10 + $0xb0] ss:$8 sps:$4 sm:$0xff]  }
 0x2f6   : > { %1326 = vmatpush1.bf16.xpose.msra.mxu0 %v1323_v24  ;;  %v4522_v22 = vld [vmem:[#allocation10 + $0xc4] ss:$8 sps:$4 sm:$0xff]   ;;  %v4520_v23 = vld [vmem:[#allocation10 + $0xc0] ss:$8 sps:$4 sm:$0xff]   ;;  %v4525_v24 = vld [vmem:[#allocation10 + $0xd4] ss:$8 sps:$4 sm:$0xff]  }
 0x2f7   : > { %v4523_v25 = vld [vmem:[#allocation10 + $0xd0] ss:$8 sps:$4 sm:$0xff]  }
 0x2fd   : > { %1358 = vmatmul.mubr.bf16.vlgmr.msra.gmra.mrb[8].mxu0 %v1321_v26  ;;  %v4528_v26 = vld [vmem:[#allocation10 + $0xe4] ss:$8 sps:$4 sm:$0xff]  }
 0x32f   : > { %v1314_v31 = vpop.f32.mrb[4].mxu0 }
 0x330   : > { %v1315_v32 = vadd.f32 %v1314_v31, %v707_v29  ;;  %v1316_v33 = vpop.f32.mrb[5].mxu0  ;;  %v4526_v29 = vld [vmem:[#allocation10 + $0xe0] ss:$8 sps:$4 sm:$0xff]   ;;  %v4529_v31 = vld [vmem:[#allocation10 + $0xf0] ss:$8 sps:$4 sm:$0xff]  }
 0x331   : > { %v1317_v34 = vadd.f32 %v1316_v33, %v711_v30  ;;  %v1318_v35 = vpop.f32.mrb[6].mxu0  ;;  %v4531_v30 = vld [vmem:[#allocation10 + $0xf4] ss:$8 sps:$4 sm:$0xff]  }
 0x332   : > { %v1384_v36 = vpack.c.bf16 %v1315_v32, %v1315_v32  ;;  %v1319_v37 = vpop.f32.mrb[7].mxu0 }
 0x333   : > { %v1385_v38 = vpack.c.bf16 %v1317_v34, %v1317_v34 }
 0x334   : > { %v1391_v39 = vsel %vm1389_vm0, %v1384_v36, 0 }
 0x335   : > { %3929 = vmatprep.subr.msk.bf16.mxu1 %vm1389_vm0, %v1385_v38  ;;  %v1471_v38 = vld [vmem:[%s5564_s6] sm:$0x3] }
 0x336   : > { %1397 = vmatpush1.bf16.msra.mxu1 %v1391_v39  ;;  %v1476_v39 = vrot.slane %v1471_v38, %v5391_v17  ;;  %v1480_v40 = vrot.slane %v1471_v38, %v5388_v16 }
 0x337   : > { %1643 = vmatprep.subr.bf16.mxu1 %v4486_v52  ;;  %v1732_v52 = vld [vmem:[#allocation11] sm:$0xff] }
 0x3d0   : > { %v1359_v41 = vpop.f32.mrb[8].mxu0 }
 0x3d1   : > { %v1370_v42 = vsel %vm1369_vm1, %v1359_v41, -1e+30  ;;  %v1361_v43 = vpop.f32.mrb[9].mxu0 }
 0x3d2   : > { %v1362_v44 = vpop.f32.mrb[10].mxu0  ;;  %v1372_v45 = vsel %vm1371_vm2, %v1370_v42, -inf }
 0x3d3   : > { %1373 = vmax.xlane.f32.xlu1 %v1372_v45  ;;  %v1363_v46 = vpop.f32.mrb[11].mxu0 }
 0x3d4   : > { %v4732_v46 = vld [vmem:[%s5348_s12] sm:$0xff] }
 0x460   : > { %v1374_v47 = vpop.xlane.xlu1 %1373 }
 0x461   : > { %v1375_v48 = vsub.f32 %v1370_v42, %v1374_v47 }
 0x463   : > { %v1376_v49 = vmul.f32 1.442695, %v1375_v48 }
 0x465   : > { %4726 = vpow2.f32 %v1376_v49  ;;  %v4733_v49 = vld [vmem:[%s5348_s12 + $0x8] sm:$0xff]  ;;  %s5603_s12 = sld [smem:[#allocation24_spill]] }
 0x46f   : > { %v4727_v50 = vpop.eup %4726 }
 0x470   : > { %v1378_v51 = vsel %vm1371_vm2, %v4727_v50, 0.0 }
 0x471   : > { %1379 = vadd.xlane.f32.xlu1 %v1378_v51 }
 0x4fe   : > { %v1380_v53 = vpop.xlane.xlu1 %1379 }
 0x4ff   : > { %4728 = vrcp.f32 %v1380_v53  ;;  %v1736_v53 = vld [vmem:[#allocation11 + $0x20] sm:$0xff] }
 0x509   : > { %v4729_v54 = vpop.eup %4728 }
 0x50a   : > { %v1382_v55 = vmul.f32 %v4729_v54, %v4727_v50  ;;  %v1733_v54 = vld [vmem:[#allocation11 + $0x8] sm:$0xff] }
 0x50c   : > { %v1383_v57 = vpack.c.bf16 %v1382_v55, %v1382_v55  ;;  %v3963_v55 = vcombine.low %v1732_v52, %v1736_v53 }
 0x50e   : > { %3930 = vmatmul.mubr.msk.bf16.vlgmr.msra.gmra.mrb[4].mxu1 %vm1371_vm2, %v1383_v57  ;;  %v1737_v57 = vld [vmem:[#allocation11 + $0x28] sm:$0xff] }
 0x50f   : > { %1644 = vmatpush1.bf16.msra.mxu1 %v4484_v56  ;;  %v3964_v56 = vcombine.high %v1732_v52, %v1736_v53  ;;  %v1788_v52 = vld [vmem:[#allocation11 + $0x1c0] sm:$0xff] }
 0x510   : > { %1645 = vmatprep.subr.bf16.mxu1 %v4489_v58  ;;  %v1740_v58 = vld [vmem:[#allocation11 + $0x40] sm:$0xff] }
 0x511   : > { %2542 = vmatprep.subr.bf16.mxu0 %v3964_v56  ;;  %v1792_v53 = vld [vmem:[#allocation11 + $0x1e0] sm:$0xff] }
 0x512   : > { %2543 = vmatpush1.bf16.msra.mxu0 %v3963_v55  ;;  %v1793_v55 = vld [vmem:[#allocation11 + $0x1e8] sm:$0xff] }
 0x513   : > { %1646 = vmatpush1.bf16.msra.mxu1 %v4487_v59  ;;  %v1744_v59 = vld [vmem:[#allocation11 + $0x60] sm:$0xff] }
 0x514   : > { %1647 = vmatprep.subr.bf16.mxu1 %v4492_v60  ;;  %v3965_v60 = vcombine.low %v1733_v54, %v1737_v57 }
 0x517   : > { %1648 = vmatpush1.bf16.msra.mxu1 %v4490_v61  ;;  %v3966_v61 = vcombine.high %v1733_v54, %v1737_v57  ;;  %v1789_v54 = vld [vmem:[#allocation11 + $0x1c8] sm:$0xff] }
 0x518   : > { %1649 = vmatprep.subr.bf16.mxu1 %v4495_v62  ;;  %v3972_v62 = vcombine.high %v1740_v58, %v1744_v59 }
 0x51a   : > { %2544 = vmatprep.subr.bf16.mxu0 %v3972_v62  ;;  %v1797_v62 = vld [vmem:[#allocation11 + $0x208] sm:$0xff] }
 0x51b   : > { %1650 = vmatpush1.bf16.msra.mxu1 %v4493_v63  ;;  %v1741_v63 = vld [vmem:[#allocation11 + $0x48] sm:$0xff] }
 0x51c   : > { %1651 = vmatprep.subr.bf16.mxu1 %v4498_v1  ;;  %v1745_v1 = vld [vmem:[#allocation11 + $0x68] sm:$0xff] }
 0x51f   : > { %1652 = vmatpush1.bf16.msra.mxu1 %v4496_v3  ;;  %v1748_v3 = vld [vmem:[#allocation11 + $0x80] sm:$0xff] }
 0x520   : > { %1653 = vmatprep.subr.bf16.mxu1 %v4501_v4  ;;  %v3974_v4 = vcombine.high %v1741_v63, %v1745_v1 }
 0x523   : > { %1654 = vmatpush1.bf16.msra.mxu1 %v4499_v5  ;;  %v1752_v5 = vld [vmem:[#allocation11 + $0xa0] sm:$0xff] }
 0x524   : > { %1655 = vmatprep.subr.bf16.mxu1 %v4504_v6  ;;  %v1749_v6 = vld [vmem:[#allocation11 + $0x88] sm:$0xff] }
 0x527   : > { %1656 = vmatpush1.bf16.msra.mxu1 %v4502_v7  ;;  %v1753_v7 = vld [vmem:[#allocation11 + $0xa8] sm:$0xff] }
 0x528   : > { %1657 = vmatprep.subr.bf16.mxu1 %v4507_v8  ;;  %v3971_v8 = vcombine.low %v1740_v58, %v1744_v59  ;;  %v4020_v58 = vcombine.high %v1788_v52, %v1792_v53  ;;  %v4022_v59 = vcombine.high %v1789_v54, %v1793_v55 }
 0x52a   : > { %2545 = vmatpush1.bf16.msra.mxu0 %v3971_v8  ;;  %v1805_v8 = vld [vmem:[#allocation11 + $0x248] sm:$0xff] }
 0x52b   : > { %1658 = vmatpush1.bf16.msra.mxu1 %v4505_v9  ;;  %v3973_v9 = vcombine.low %v1741_v63, %v1745_v1  ;;  %v1801_v63 = vld [vmem:[#allocation11 + $0x228] sm:$0xff]  ;;  %v4019_v1 = vcombine.low %v1788_v52, %v1792_v53 }
 0x52c   : > { %1659 = vmatprep.subr.bf16.mxu1 %v4510_v10  ;;  %v3980_v10 = vcombine.high %v1748_v3, %v1752_v5 }
 0x52e   : > { %2546 = vmatprep.subr.bf16.mxu0 %v3980_v10 }
 0x52f   : > { %1660 = vmatpush1.bf16.msra.mxu1 %v4508_v11  ;;  %v3982_v11 = vcombine.high %v1749_v6, %v1753_v7 }
 0x530   : > { %1661 = vmatprep.subr.bf16.mxu1 %v4513_v12  ;;  %v1756_v12 = vld [vmem:[#allocation11 + $0xc0] sm:$0xff] }
 0x533   : > { %1662 = vmatpush1.bf16.msra.mxu1 %v4511_v14  ;;  %v1760_v14 = vld [vmem:[#allocation11 + $0xe0] sm:$0xff] }
 0x534   : > { %1663 = vmatprep.subr.bf16.mxu1 %v4516_v18  ;;  %v1757_v18 = vld [vmem:[#allocation11 + $0xc8] sm:$0xff] }
 0x537   : > { %1664 = vmatpush1.bf16.msra.mxu1 %v4514_v19  ;;  %v1761_v19 = vld [vmem:[#allocation11 + $0xe8] sm:$0xff] }
 0x538   : > { %1665 = vmatprep.subr.bf16.mxu1 %v4519_v20  ;;  %v3979_v20 = vcombine.low %v1748_v3, %v1752_v5  ;;  %v4021_v3 = vcombine.low %v1789_v54, %v1793_v55  ;;  %v4030_v5 = vcombine.high %v1797_v62, %v1801_v63  ;;  %v1836_v55 = vld [vmem:[#allocation11 + $0x340] sm:$0xff] }
 0x53a   : > { %2547 = vmatpush1.bf16.msra.mxu0 %v3979_v20  ;;  %v1813_v20 = vld [vmem:[#allocation11 + $0x288] sm:$0xff] }
 0x53b   : > { %1666 = vmatpush1.bf16.msra.mxu1 %v4517_v21  ;;  %v3981_v21 = vcombine.low %v1749_v6, %v1753_v7  ;;  %v1804_v6 = vld [vmem:[#allocation11 + $0x240] sm:$0xff] }
 0x53c   : > { %1667 = vmatprep.subr.bf16.mxu1 %v4522_v22  ;;  %v3988_v22 = vcombine.high %v1756_v12, %v1760_v14  ;;  %v1808_v7 = vld [vmem:[#allocation11 + $0x260] sm:$0xff] }
 0x53e   : > { %2548 = vmatprep.subr.bf16.mxu0 %v3988_v22  ;;  %v4035_v22 = vcombine.low %v1804_v6, %v1808_v7 }
 0x53f   : > { %1668 = vmatpush1.bf16.msra.mxu1 %v4520_v23  ;;  %v3990_v23 = vcombine.high %v1757_v18, %v1761_v19 }
 0x540   : > { %1669 = vmatprep.subr.bf16.mxu1 %v4525_v24  ;;  %v1764_v24 = vld [vmem:[#allocation11 + $0x100] sm:$0xff] }
 0x543   : > { %1670 = vmatpush1.bf16.msra.mxu1 %v4523_v25  ;;  %v1768_v25 = vld [vmem:[#allocation11 + $0x120] sm:$0xff] }
 0x544   : > { %1671 = vmatprep.subr.bf16.mxu1 %v4528_v26  ;;  %v1765_v26 = vld [vmem:[#allocation11 + $0x108] sm:$0xff]  ;;  %v3995_v38 = vcombine.low %v1764_v24, %v1768_v25 }
 0x547   : > { %1672 = vmatpush1.bf16.msra.mxu1 %v4526_v29  ;;  %v1769_v29 = vld [vmem:[#allocation11 + $0x128] sm:$0xff] }
 0x548   : > { %1673 = vmatprep.subr.bf16.mxu1 %v4531_v30  ;;  %v3987_v30 = vcombine.low %v1756_v12, %v1760_v14  ;;  %v4036_v12 = vcombine.high %v1804_v6, %v1808_v7 }
 0x54a   : > { %2549 = vmatpush1.bf16.msra.mxu0 %v3987_v30 }
 0x54b   : > { %1674 = vmatpush1.bf16.msra.mxu1 %v4529_v31  ;;  %v3989_v31 = vcombine.low %v1757_v18, %v1761_v19  ;;  %v1812_v18 = vld [vmem:[#allocation11 + $0x280] sm:$0xff] }
 0x54c   : > { %2583 = vmatprep.subr.bf16.mxu1 %v3966_v61  ;;  %v1800_v61 = vld [vmem:[#allocation11 + $0x220] sm:$0xff] }
 0x54d   : > { %v1816_v19 = vld [vmem:[#allocation11 + $0x2a0] sm:$0xff] }
 0x5e1   : > { %v1430_v32 = vpop.f32.mrb[4].mxu1 }
 0x5e2   : > { %v1432_v33 = vpop.f32.mrb[5].mxu1  ;;  %v1437_v36 = vpack.c.bf16 %v1430_v32, %v1430_v32  ;;  %v3996_v32 = vcombine.high %v1764_v24, %v1768_v25  ;;  %v4044_v24 = vcombine.high %v1812_v18, %v1816_v19 }
 0x5e3   : > { %v1438_v34 = vpack.c.bf16 %v1432_v33, %v1432_v33  ;;  %v1434_v35 = vpop.f32.mrb[6].mxu1  ;;  %v3998_v33 = vcombine.high %v1765_v26, %v1769_v29 }
 0x5e4   : > { %v1435_v37 = vpop.f32.mrb[7].mxu1  ;;  %v1776_v35 = vld [vmem:[#allocation11 + $0x160] sm:$0xff]  ;;  %2550 = vmatprep.subr.bf16.mxu0 %v3996_v32 }
 0x5e5   : > { %1675 = vmatprep.mubr.bf16.mxu1 %v1438_v34  ;;  %v1772_v34 = vld [vmem:[#allocation11 + $0x140] sm:$0xff]  ;;  %v1777_v37 = vld [vmem:[#allocation11 + $0x168] sm:$0xff]  ;;  %2551 = vmatpush1.bf16.msra.mxu0 %v3995_v38 }
 0x5e6   : > { %1676 = vmatmul.mubr.bf16.vlgmr.msra.gmra.mrb[8].mxu1 %v1437_v36  ;;  %v1773_v36 = vld [vmem:[#allocation11 + $0x148] sm:$0xff]  ;;  %v1824_v38 = vld [vmem:[#allocation11 + $0x2e0] sm:$0xff] }
 0x5e7   : > { %2584 = vmatpush1.bf16.msra.mxu1 %v3965_v60  ;;  %v1796_v60 = vld [vmem:[#allocation11 + $0x200] sm:$0xff] }
 0x5e8   : > { %2585 = vmatprep.subr.bf16.mxu1 %v3974_v4  ;;  %v4028_v4 = vcombine.high %v1796_v60, %v1800_v61  ;;  %v4027_v10 = vcombine.low %v1796_v60, %v1800_v61 }
 0x5eb   : > { %2586 = vmatpush1.bf16.msra.mxu1 %v3973_v9  ;;  %v1809_v9 = vld [vmem:[#allocation11 + $0x268] sm:$0xff] }
 0x5ec   : > { %2587 = vmatprep.subr.bf16.mxu1 %v3982_v11  ;;  %v4029_v11 = vcombine.low %v1797_v62, %v1801_v63  ;;  %v4038_v14 = vcombine.high %v1805_v8, %v1809_v9  ;;  %v1844_v63 = vld [vmem:[#allocation11 + $0x380] sm:$0xff] }
 0x5ef   : > { %2588 = vmatpush1.bf16.msra.mxu1 %v3981_v21  ;;  %v1817_v21 = vld [vmem:[#allocation11 + $0x2a8] sm:$0xff] }
 0x5f0   : > { %2589 = vmatprep.subr.bf16.mxu1 %v3990_v23  ;;  %v4037_v23 = vcombine.low %v1805_v8, %v1809_v9  ;;  %v4046_v25 = vcombine.high %v1813_v20, %v1817_v21  ;;  %v1852_v9 = vld [vmem:[#allocation11 + $0x3c0] sm:$0xff] }
 0x5f3   : > { %2590 = vmatpush1.bf16.msra.mxu1 %v3989_v31 }
 0x5f4   : > { %2591 = vmatprep.subr.bf16.mxu1 %v3998_v33 }
 0x6b9   : > { %v1677_v41 = vpop.f32.mrb[8].mxu1 }
 0x6ba   : > { %v1678_v42 = vadd.f32 %v1677_v41, %v1476_v39  ;;  %v1679_v43 = vpop.f32.mrb[9].mxu1  ;;  %v3997_v39 = vcombine.low %v1765_v26, %v1769_v29  ;;  %v4006_v41 = vcombine.high %v1773_v36, %v1777_v37  ;;  %v4043_v26 = vcombine.low %v1812_v18, %v1816_v19 }
 0x6bb   : > { %v1680_v44 = vadd.f32 %v1679_v43, %v1480_v40  ;;  %v1681_v45 = vpop.f32.mrb[10].mxu1  ;;  %v4004_v40 = vcombine.high %v1772_v34, %v1776_v35  ;;  %v1784_v43 = vld [vmem:[#allocation11 + $0x1a0] sm:$0xff]  ;;  %v4045_v29 = vcombine.low %v1813_v20, %v1817_v21  ;;  %v1734_v21 = vld [vmem:[#allocation11 + $0x10] sm:$0xff] }
 0x6bc   : > { %v5433_v47 = vadd.f32 %v4732_v46, %v1678_v42  ;;  %v1682_v48 = vpop.f32.mrb[11].mxu1  ;;  %v1780_v42 = vld [vmem:[#allocation11 + $0x180] sm:$0xff]  ;;  %v1785_v45 = vld [vmem:[#allocation11 + $0x1a8] sm:$0xff]  ;;  %v4003_v46 = vcombine.low %v1772_v34, %v1776_v35  ;;  %2592 = vmatpush1.bf16.msra.mxu1 %v3997_v39 }
 0x6bd   : > { %v5436_v50 = vadd.f32 %v4733_v49, %v1680_v44  ;;  %v1781_v44 = vld [vmem:[#allocation11 + $0x188] sm:$0xff]  ;;  %2552 = vmatprep.subr.bf16.mxu0 %v4004_v40  ;;  %v4005_v48 = vcombine.low %v1773_v36, %v1777_v37  ;;  %v4012_v49 = vcombine.high %v1780_v42, %v1784_v43  ;;  %2593 = vmatprep.subr.bf16.mxu1 %v4006_v41  ;;  %v1820_v37 = vld [vmem:[#allocation11 + $0x2c0] sm:$0xff] }
 0x6be   : > { %2553 = vmatpush1.bf16.msra.mxu0 %v4003_v46  ;;  %v4011_v56 = vcombine.low %v1780_v42, %v1784_v43  ;;  %v4013_v57 = vcombine.low %v1781_v44, %v1785_v45  ;;  %v1821_v39 = vld [vmem:[#allocation11 + $0x2c8] sm:$0xff]  ;;  %v4052_v40 = vcombine.high %v1820_v37, %v1824_v38  ;;  %v4051_v42 = vcombine.low %v1820_v37, %v1824_v38  ;;  %v1832_v46 = vld [vmem:[#allocation11 + $0x320] sm:$0xff]  ;;  %v1687_v37 = vld [vmem:[%s5602_s29] sm:$0x3]  ;;  %s5514_s29 = scalar_lea.hbm %s5605_s22, %s4225_s23 }
 0x6bf   : > { %v1688_v51 = vadd.f32 %v5436_v50, %v5433_v47  ;;  %2554 = vmatprep.subr.bf16.mxu0 %v4012_v49  ;;  %v1825_v41 = vld [vmem:[#allocation11 + $0x2e8] sm:$0xff] }
 0x6c0   : > { %2594 = vmatpush1.bf16.msra.mxu1 %v4005_v48  ;;  %v4053_v43 = vcombine.low %v1821_v39, %v1825_v41  ;;  %v1829_v48 = vld [vmem:[#allocation11 + $0x308] sm:$0xff] }
 0x6c1   : > { %1689 = vadd.xlane.f32.xlu0 %v1688_v51  ;;  %v4014_v51 = vcombine.high %v1781_v44, %v1785_v45  ;;  %v4054_v44 = vcombine.high %v1821_v39, %v1825_v41  ;;  %v1828_v45 = vld [vmem:[#allocation11 + $0x300] sm:$0xff] }
 0x6c2   : > { %2555 = vmatpush1.bf16.msra.mxu0 %v4011_v56  ;;  %v4060_v49 = vcombine.high %v1828_v45, %v1832_v46  ;;  %v4059_v52 = vcombine.low %v1828_v45, %v1832_v46  ;;  %v1840_v56 = vld [vmem:[#allocation11 + $0x360] sm:$0xff] }
 0x6c3   : > { %2595 = vmatprep.subr.bf16.mxu1 %v4014_v51  ;;  %2556 = vmatprep.subr.bf16.mxu0 %v4020_v58  ;;  %v1833_v51 = vld [vmem:[#allocation11 + $0x328] sm:$0xff]  ;;  %v4068_v58 = vcombine.high %v1836_v55, %v1840_v56  ;;  %v4067_v60 = vcombine.low %v1836_v55, %v1840_v56 }
 0x6c4   : > { %2596 = vmatpush1.bf16.msra.mxu1 %v4013_v57  ;;  %v4061_v53 = vcombine.low %v1829_v48, %v1833_v51  ;;  %v4062_v54 = vcombine.high %v1829_v48, %v1833_v51  ;;  %v1837_v57 = vld [vmem:[#allocation11 + $0x348] sm:$0xff]  ;;  %v1742_v51 = vld [vmem:[#allocation11 + $0x50] sm:$0xff] }
 0x6c5   : > { %2597 = vmatprep.subr.bf16.mxu1 %v4022_v59  ;;  %v1841_v59 = vld [vmem:[#allocation11 + $0x368] sm:$0xff] }
 0x6c6   : > { %2557 = vmatpush1.bf16.msra.mxu0 %v4019_v1  ;;  %v4069_v61 = vcombine.low %v1837_v57, %v1841_v59  ;;  %v4070_v62 = vcombine.high %v1837_v57, %v1841_v59  ;;  %v1848_v1 = vld [vmem:[#allocation11 + $0x3a0] sm:$0xff]  ;;  %v1750_v57 = vld [vmem:[#allocation11 + $0x90] sm:$0xff]  ;;  %v1751_v59 = vld [vmem:[#allocation11 + $0x98] sm:$0xff] }
 0x6c7   : > { %2558 = vmatprep.subr.bf16.mxu0 %v4028_v4  ;;  %v4076_v4 = vcombine.high %v1844_v63, %v1848_v1  ;;  %v4075_v6 = vcombine.low %v1844_v63, %v1848_v1 }
 0x6c8   : > { %2598 = vmatpush1.bf16.msra.mxu1 %v4021_v3  ;;  %v1845_v3 = vld [vmem:[#allocation11 + $0x388] sm:$0xff] }
 0x6c9   : > { %2599 = vmatprep.subr.bf16.mxu1 %v4030_v5  ;;  %v1849_v5 = vld [vmem:[#allocation11 + $0x3a8] sm:$0xff] }
 0x6ca   : > { %2559 = vmatpush1.bf16.msra.mxu0 %v4027_v10  ;;  %v4077_v7 = vcombine.low %v1845_v3, %v1849_v5  ;;  %v4078_v8 = vcombine.high %v1845_v3, %v1849_v5  ;;  %v1856_v10 = vld [vmem:[#allocation11 + $0x3e0] sm:$0xff]  ;;  %v1758_v3 = vld [vmem:[#allocation11 + $0xd0] sm:$0xff]  ;;  %v1759_v5 = vld [vmem:[#allocation11 + $0xd8] sm:$0xff] }
 0x6cb   : > { %2560 = vmatprep.subr.bf16.mxu0 %v4036_v12  ;;  %v4084_v12 = vcombine.high %v1852_v9, %v1856_v10  ;;  %v4083_v18 = vcombine.low %v1852_v9, %v1856_v10 }
 0x6cc   : > { %2600 = vmatpush1.bf16.msra.mxu1 %v4029_v11  ;;  %v1853_v11 = vld [vmem:[#allocation11 + $0x3c8] sm:$0xff] }
 0x6cd   : > { %2601 = vmatprep.subr.bf16.mxu1 %v4038_v14  ;;  %v1857_v14 = vld [vmem:[#allocation11 + $0x3e8] sm:$0xff] }
 0x6ce   : > { %2561 = vmatpush1.bf16.msra.mxu0 %v4035_v22  ;;  %v4086_v19 = vcombine.high %v1853_v11, %v1857_v14  ;;  %v4085_v20 = vcombine.low %v1853_v11, %v1857_v14  ;;  %v1738_v22 = vld [vmem:[#allocation11 + $0x30] sm:$0xff]  ;;  %v1767_v14 = vld [vmem:[#allocation11 + $0x118] sm:$0xff] }
 0x6cf   : > { %2562 = vmatprep.subr.bf16.mxu0 %v4044_v24  ;;  %v3968_v24 = vcombine.high %v1734_v21, %v1738_v22  ;;  %v1766_v11 = vld [vmem:[#allocation11 + $0x110] sm:$0xff] }
 0x6d0   : > { %2602 = vmatpush1.bf16.msra.mxu1 %v4037_v23  ;;  %v1735_v23 = vld [vmem:[#allocation11 + $0x18] sm:$0xff] }
 0x6d1   : > { %2603 = vmatprep.subr.bf16.mxu1 %v4046_v25  ;;  %v1739_v25 = vld [vmem:[#allocation11 + $0x38] sm:$0xff] }
 0x6d2   : > { %2563 = vmatpush1.bf16.msra.mxu0 %v4043_v26  ;;  %v3967_v26 = vcombine.low %v1734_v21, %v1738_v22 }
 0x6d3   : > { %2564 = vmatprep.subr.bf16.mxu0 %v4052_v40 }
 0x6d4   : > { %2604 = vmatpush1.bf16.msra.mxu1 %v4045_v29  ;;  %v3969_v29 = vcombine.low %v1735_v23, %v1739_v25 }
 0x6d5   : > { %2605 = vmatprep.subr.bf16.mxu1 %v4054_v44  ;;  %v1721_v44 = vrot.slane %v1687_v37, %v5391_v17 }
 0x6d6   : > { %2565 = vmatpush1.bf16.msra.mxu0 %v4051_v42 }
 0x6d7   : > { %2566 = vmatprep.subr.bf16.mxu0 %v4060_v49 }
 0x6d8   : > { %2606 = vmatpush1.bf16.msra.mxu1 %v4053_v43  ;;  %v1725_v43 = vrot.slane %v1687_v37, %v5388_v16  ;;  %v1783_v37 = vld [vmem:[#allocation11 + $0x198] sm:$0xff] }
 0x6d9   : > { %2607 = vmatprep.subr.bf16.mxu1 %v4062_v54  ;;  %v1747_v54 = vld [vmem:[#allocation11 + $0x78] sm:$0xff] }
 0x6da   : > { %2567 = vmatpush1.bf16.msra.mxu0 %v4059_v52  ;;  %v1746_v52 = vld [vmem:[#allocation11 + $0x70] sm:$0xff] }
 0x6db   : > { %2568 = vmatprep.subr.bf16.mxu0 %v4068_v58  ;;  %v1754_v58 = vld [vmem:[#allocation11 + $0xb0] sm:$0xff] }
 0x6dc   : > { %2608 = vmatpush1.bf16.msra.mxu1 %v4061_v53  ;;  %v1743_v53 = vld [vmem:[#allocation11 + $0x58] sm:$0xff]  ;;  %v3984_v63 = vcombine.high %v1750_v57, %v1754_v58 }
 0x6dd   : > { %2609 = vmatprep.subr.bf16.mxu1 %v4070_v62  ;;  %v3977_v62 = vcombine.low %v1743_v53, %v1747_v54 }
 0x6de   : > { %2569 = vmatpush1.bf16.msra.mxu0 %v4067_v60  ;;  %v1755_v60 = vld [vmem:[#allocation11 + $0xb8] sm:$0xff] }
 0x6df   : > { %2570 = vmatprep.subr.bf16.mxu0 %v4076_v4  ;;  %v3986_v1 = vcombine.high %v1751_v59, %v1755_v60  ;;  %v1762_v4 = vld [vmem:[#allocation11 + $0xf0] sm:$0xff] }
 0x6e0   : > { %2610 = vmatpush1.bf16.msra.mxu1 %v4069_v61  ;;  %v3975_v61 = vcombine.low %v1742_v51, %v1746_v52  ;;  %v3992_v9 = vcombine.high %v1758_v3, %v1762_v4 }
 0x6e1   : > { %2611 = vmatprep.subr.bf16.mxu1 %v4078_v8  ;;  %v3985_v8 = vcombine.low %v1751_v59, %v1755_v60  ;;  %v1806_v60 = vld [vmem:[#allocation11 + $0x250] sm:$0xff] }
 0x6e2   : > { %2571 = vmatpush1.bf16.msra.mxu0 %v4075_v6  ;;  %v1763_v6 = vld [vmem:[#allocation11 + $0xf8] sm:$0xff] }
 0x6e3   : > { %2572 = vmatprep.subr.bf16.mxu0 %v4084_v12  ;;  %v3994_v10 = vcombine.high %v1759_v5, %v1763_v6  ;;  %v1770_v12 = vld [vmem:[#allocation11 + $0x130] sm:$0xff] }
 0x6e4   : > { %2612 = vmatpush1.bf16.msra.mxu1 %v4077_v7  ;;  %v3983_v7 = vcombine.low %v1750_v57, %v1754_v58  ;;  %v4000_v21 = vcombine.high %v1766_v11, %v1770_v12  ;;  %v1803_v57 = vld [vmem:[#allocation11 + $0x238] sm:$0xff] }
 0x6e5   : > { %2613 = vmatprep.subr.bf16.mxu1 %v4086_v19  ;;  %v3991_v19 = vcombine.low %v1758_v3, %v1762_v4 }
 0x6e6   : > { %2573 = vmatpush1.bf16.msra.mxu0 %v4083_v18  ;;  %v1771_v18 = vld [vmem:[#allocation11 + $0x138] sm:$0xff] }
 0x6e7   : > { %2624 = vmatprep.subr.bf16.mxu0 %v3968_v24  ;;  %v4002_v22 = vcombine.high %v1767_v14, %v1771_v18  ;;  %v1778_v24 = vld [vmem:[#allocation11 + $0x170] sm:$0xff] }
 0x6e8   : > { %2614 = vmatpush1.bf16.msra.mxu1 %v4085_v20  ;;  %v3993_v20 = vcombine.low %v1759_v5, %v1763_v6  ;;  %v1814_v6 = vld [vmem:[#allocation11 + $0x290] sm:$0xff] }
 0x74e   : > { %v1690_v30 = vpop.xlane.xlu0 %1689 }
 0x74f   : > { %v1691_v31 = vmul.f32 0.00390625, %v1690_v30  ;;  %v3970_v30 = vcombine.high %v1735_v23, %v1739_v25  ;;  %v1774_v23 = vld [vmem:[#allocation11 + $0x150] sm:$0xff]  ;;  %v1775_v25 = vld [vmem:[#allocation11 + $0x158] sm:$0xff] }
 0x751   : > { %v5441_v32 = vsub.f32 %v5433_v47, %v1691_v31  ;;  %v5444_v33 = vsub.f32 %v5436_v50, %v1691_v31  ;;  %2665 = vmatprep.subr.bf16.mxu1 %v3970_v30  ;;  %v4001_v30 = vcombine.low %v1767_v14, %v1771_v18  ;;  %v1822_v18 = vld [vmem:[#allocation11 + $0x2d0] sm:$0xff] }
 0x753   : > { %v1694_v34 = vmul.f32 %v5441_v32, %v5441_v32  ;;  %v1695_v35 = vmul.f32 %v5444_v33, %v5444_v33 }
 0x755   : > { %v1696_v36 = vadd.f32 %v1695_v35, %v1694_v34 }
 0x757   : > { %1697 = vadd.xlane.f32.xlu1 %v1696_v36  ;;  %v1686_v36 = vld [vmem:[%s5601_s10] sm:$0x3] }
 0x758   : > { %v1712_v38 = vrot.slane %v1686_v36, %v5388_v16  ;;  %v1708_v39 = vrot.slane %v1686_v36, %v5391_v17  ;;  %v1786_v36 = vld [vmem:[#allocation11 + $0x1b0] sm:$0xff] }
 0x7e4   : > { %v1698_v31 = vpop.xlane.xlu1 %1697 }
 0x7e5   : > { %v1699_v34 = vmul.f32 0.00390625, %v1698_v31  ;;  %v4008_v31 = vcombine.high %v1774_v23, %v1778_v24 }
 0x7e7   : > { %v1700_v35 = vadd.f32 1e-05, %v1699_v34 }
 0x7e9   : > { %4730 = vrsqrt.f32 %v1700_v35  ;;  %v1782_v35 = vld [vmem:[#allocation11 + $0x190] sm:$0xff] }
 0x7f3   : > { %v4731_v40 = vpop.eup %4730 }
 0x7f4   : > { %v1702_v41 = vmul.f32 %v4731_v40, %v5441_v32  ;;  %v1703_v42 = vmul.f32 %v4731_v40, %v5444_v33  ;;  %v3976_v32 = vcombine.high %v1742_v51, %v1746_v52  ;;  %v3978_v33 = vcombine.high %v1743_v53, %v1747_v54  ;;  %v1798_v53 = vld [vmem:[#allocation11 + $0x210] sm:$0xff] }
 0x7f5   : > { %v1802_v54 = vld [vmem:[#allocation11 + $0x230] sm:$0xff] }
 0x7f6   : > { %v1716_v45 = vmul.f32 %v1712_v38, %v1703_v42  ;;  %v1715_v46 = vmul.f32 %v1708_v39, %v1702_v41  ;;  %v1787_v38 = vld [vmem:[#allocation11 + $0x1b8] sm:$0xff]  ;;  %v4007_v39 = vcombine.low %v1774_v23, %v1778_v24  ;;  %v4016_v41 = vcombine.high %v1782_v35, %v1786_v36 }
 0x7f7   : > { %v4018_v42 = vcombine.high %v1783_v37, %v1787_v38  ;;  %v4032_v58 = vcombine.high %v1798_v53, %v1802_v54 }
 0x7f8   : > { %v1729_v48 = vadd.f32 %v1725_v43, %v1716_v45  ;;  %v1728_v49 = vadd.f32 %v1721_v44, %v1715_v46  ;;  %v1790_v43 = vld [vmem:[#allocation11 + $0x1d0] sm:$0xff]  ;;  %v1791_v45 = vld [vmem:[#allocation11 + $0x1d8] sm:$0xff] }
 0x7f9   : > { %v1794_v44 = vld [vmem:[#allocation11 + $0x1f0] sm:$0xff]  ;;  %v1795_v46 = vld [vmem:[#allocation11 + $0x1f8] sm:$0xff] }
 0x7fa   : > { %v1731_v55 = vpack.c.bf16 %v1729_v48, %v1729_v48  ;;  %v5462_v56 = vpack.c.bf16 %v1728_v49, %v1728_v49  ;;  %v4015_v48 = vcombine.low %v1782_v35, %v1786_v36  ;;  %v4017_v49 = vcombine.low %v1783_v37, %v1787_v38  ;;  %v1838_v38 = vld [vmem:[#allocation11 + $0x350] sm:$0xff] }
 0x7fb   : > { %v4024_v51 = vcombine.high %v1790_v43, %v1794_v44  ;;  %v4026_v52 = vcombine.high %v1791_v45, %v1795_v46 }
 0x7fc   : > { %2574 = vmatprep.mubr.bf16.mxu0 %v1731_v55  ;;  %2615 = vmatprep.mubr.bf16.mxu1 %v1731_v55 }
 0x7fd   : > { %2575 = vmatmul.mubr.bf16.vlgmr.msra.gmra.mrb[12].mxu0 %v5462_v56  ;;  %2616 = vmatmul.mubr.bf16.vlgmr.msra.gmra.mrb[12].mxu1 %v5462_v56 }
 0x7fe   : > { %2625 = vmatpush1.bf16.msra.mxu0 %v3967_v26  ;;  %2666 = vmatpush1.bf16.msra.mxu1 %v3969_v29  ;;  %v1779_v26 = vld [vmem:[#allocation11 + $0x178] sm:$0xff]  ;;  %v3999_v29 = vcombine.low %v1766_v11, %v1770_v12 }
 0x7ff   : > { %2656 = vmatprep.mubr.bf16.mxu0 %v1731_v55  ;;  %2697 = vmatprep.mubr.bf16.mxu1 %v1731_v55  ;;  %v4010_v34 = vcombine.high %v1775_v25, %v1779_v26  ;;  %v4009_v40 = vcombine.low %v1775_v25, %v1779_v26  ;;  %v1799_v55 = vld [vmem:[#allocation11 + $0x218] sm:$0xff]  ;;  %v1830_v26 = vld [vmem:[#allocation11 + $0x310] sm:$0xff] }
 0x800   : > { %2626 = vmatprep.subr.bf16.mxu0 %v3976_v32  ;;  %2667 = vmatprep.subr.bf16.mxu1 %v3978_v33  ;;  %v4023_v32 = vcombine.low %v1790_v43, %v1794_v44  ;;  %v4025_v33 = vcombine.low %v1791_v45, %v1795_v46  ;;  %v4034_v59 = vcombine.high %v1799_v55, %v1803_v57  ;;  %v1846_v46 = vld [vmem:[#allocation11 + $0x390] sm:$0xff] }
 0x801   : > { %v4033_v3 = vcombine.low %v1799_v55, %v1803_v57  ;;  %v1854_v57 = vld [vmem:[#allocation11 + $0x3d0] sm:$0xff] }
 0x802   : > { %2627 = vmatpush1.bf16.msra.mxu0 %v3975_v61  ;;  %2668 = vmatpush1.bf16.msra.mxu1 %v3977_v62  ;;  %v1810_v61 = vld [vmem:[#allocation11 + $0x270] sm:$0xff]  ;;  %v1807_v62 = vld [vmem:[#allocation11 + $0x258] sm:$0xff] }
 0x803   : > { %2628 = vmatprep.subr.bf16.mxu0 %v3984_v63  ;;  %2669 = vmatprep.subr.bf16.mxu1 %v3986_v1  ;;  %v1811_v63 = vld [vmem:[#allocation11 + $0x278] sm:$0xff]  ;;  %v4031_v1 = vcombine.low %v1798_v53, %v1802_v54  ;;  %v4040_v4 = vcombine.high %v1806_v60, %v1810_v61 }
 0x804   : > { %v4042_v5 = vcombine.high %v1807_v62, %v1811_v63  ;;  %v4041_v11 = vcombine.low %v1807_v62, %v1811_v63 }
 0x806   : > { %2629 = vmatpush1.bf16.msra.mxu0 %v3983_v7  ;;  %2670 = vmatpush1.bf16.msra.mxu1 %v3985_v8  ;;  %v1818_v7 = vld [vmem:[#allocation11 + $0x2b0] sm:$0xff]  ;;  %v1815_v8 = vld [vmem:[#allocation11 + $0x298] sm:$0xff] }
 0x807   : > { %2630 = vmatprep.subr.bf16.mxu0 %v3992_v9  ;;  %2671 = vmatprep.subr.bf16.mxu1 %v3994_v10  ;;  %v1819_v9 = vld [vmem:[#allocation11 + $0x2b8] sm:$0xff]  ;;  %v4039_v10 = vcombine.low %v1806_v60, %v1810_v61  ;;  %v4048_v12 = vcombine.high %v1814_v6, %v1818_v7 }
 0x808   : > { %v4050_v14 = vcombine.high %v1815_v8, %v1819_v9  ;;  %v4049_v23 = vcombine.low %v1815_v8, %v1819_v9  ;;  %v4543_v8 = vld [vmem:[#allocation13 + $0x114] ss:$8 sps:$4 sm:$0xff]   ;;  %v4538_v9 = vld [vmem:[#allocation13 + $0x10] ss:$8 sps:$4 sm:$0xff]  }
 0x80a   : > { %2631 = vmatpush1.bf16.msra.mxu0 %v3991_v19  ;;  %2672 = vmatpush1.bf16.msra.mxu1 %v3993_v20  ;;  %v1826_v19 = vld [vmem:[#allocation11 + $0x2f0] sm:$0xff]  ;;  %v1823_v20 = vld [vmem:[#allocation11 + $0x2d8] sm:$0xff] }
 0x80b   : > { %2632 = vmatprep.subr.bf16.mxu0 %v4000_v21  ;;  %2673 = vmatprep.subr.bf16.mxu1 %v4002_v22  ;;  %v1827_v21 = vld [vmem:[#allocation11 + $0x2f8] sm:$0xff]  ;;  %v4047_v22 = vcombine.low %v1814_v6, %v1818_v7  ;;  %v4056_v24 = vcombine.high %v1822_v18, %v1826_v19  ;;  %v4535_v6 = vld [vmem:[#allocation13 + $0x100] ss:$8 sps:$4 sm:$0xff]  }
 0x80c   : > { %v4058_v25 = vcombine.high %v1823_v20, %v1827_v21  ;;  %v4057_v35 = vcombine.low %v1823_v20, %v1827_v21  ;;  %v4540_v7 = vld [vmem:[#allocation13 + $0x14] ss:$8 sps:$4 sm:$0xff]   ;;  %v4550_v21 = vld [vmem:[#allocation13 + $0x30] ss:$8 sps:$4 sm:$0xff]  }
 0x80d   : > { %v4555_v20 = vld [vmem:[#allocation13 + $0x134] ss:$8 sps:$4 sm:$0xff]  }
 0x80e   : > { %2633 = vmatpush1.bf16.msra.mxu0 %v3999_v29  ;;  %2674 = vmatpush1.bf16.msra.mxu1 %v4001_v30  ;;  %v1834_v29 = vld [vmem:[#allocation11 + $0x330] sm:$0xff]  ;;  %v1831_v30 = vld [vmem:[#allocation11 + $0x318] sm:$0xff] }
 0x80f   : > { %2634 = vmatprep.subr.bf16.mxu0 %v4008_v31  ;;  %2675 = vmatprep.subr.bf16.mxu1 %v4010_v34  ;;  %v1835_v31 = vld [vmem:[#allocation11 + $0x338] sm:$0xff]  ;;  %v4055_v34 = vcombine.low %v1822_v18, %v1826_v19  ;;  %v4064_v36 = vcombine.high %v1830_v26, %v1834_v29  ;;  %v4547_v18 = vld [vmem:[#allocation13 + $0x120] ss:$8 sps:$4 sm:$0xff]  }
 0x810   : > { %v4066_v37 = vcombine.high %v1831_v30, %v1835_v31  ;;  %v4065_v43 = vcombine.low %v1831_v30, %v1835_v31  ;;  %v4552_v19 = vld [vmem:[#allocation13 + $0x34] ss:$8 sps:$4 sm:$0xff]   ;;  %v4562_v30 = vld [vmem:[#allocation13 + $0x50] ss:$8 sps:$4 sm:$0xff]  }
 0x811   : > { %v4565_v31 = vld [vmem:[#allocation13 + $0x150] ss:$8 sps:$4 sm:$0xff]  }
 0x812   : > { %2635 = vmatpush1.bf16.msra.mxu0 %v4007_v39  ;;  %2676 = vmatpush1.bf16.msra.mxu1 %v4009_v40  ;;  %v1842_v39 = vld [vmem:[#allocation11 + $0x370] sm:$0xff]  ;;  %v1839_v40 = vld [vmem:[#allocation11 + $0x358] sm:$0xff] }
 0x813   : > { %2636 = vmatprep.subr.bf16.mxu0 %v4016_v41  ;;  %2677 = vmatprep.subr.bf16.mxu1 %v4018_v42  ;;  %v1843_v41 = vld [vmem:[#allocation11 + $0x378] sm:$0xff]  ;;  %v4063_v42 = vcombine.low %v1830_v26, %v1834_v29  ;;  %v4072_v44 = vcombine.high %v1838_v38, %v1842_v39 }
 0x814   : > { %v4074_v45 = vcombine.high %v1839_v40, %v1843_v41  ;;  %v4073_v53 = vcombine.low %v1839_v40, %v1843_v41  ;;  %v4564_v26 = vld [vmem:[#allocation13 + $0x54] ss:$8 sps:$4 sm:$0xff]   ;;  %v4574_v40 = vld [vmem:[#allocation13 + $0x70] ss:$8 sps:$4 sm:$0xff]  }
 0x815   : > { %v4567_v29 = vld [vmem:[#allocation13 + $0x154] ss:$8 sps:$4 sm:$0xff]   ;;  %v4577_v41 = vld [vmem:[#allocation13 + $0x170] ss:$8 sps:$4 sm:$0xff]  }
 0x816   : > { %2637 = vmatpush1.bf16.msra.mxu0 %v4015_v48  ;;  %2678 = vmatpush1.bf16.msra.mxu1 %v4017_v49  ;;  %v1850_v48 = vld [vmem:[#allocation11 + $0x3b0] sm:$0xff]  ;;  %v1847_v49 = vld [vmem:[#allocation11 + $0x398] sm:$0xff] }
 0x817   : > { %2638 = vmatprep.subr.bf16.mxu0 %v4024_v51  ;;  %2679 = vmatprep.subr.bf16.mxu1 %v4026_v52  ;;  %v1851_v51 = vld [vmem:[#allocation11 + $0x3b8] sm:$0xff]  ;;  %v4071_v52 = vcombine.low %v1838_v38, %v1842_v39  ;;  %v4080_v54 = vcombine.high %v1846_v46, %v1850_v48 }
 0x818   : > { %v4082_v55 = vcombine.high %v1847_v49, %v1851_v51  ;;  %v4081_v60 = vcombine.low %v1847_v49, %v1851_v51  ;;  %v4576_v38 = vld [vmem:[#allocation13 + $0x74] ss:$8 sps:$4 sm:$0xff]   ;;  %v4586_v49 = vld [vmem:[#allocation13 + $0x90] ss:$8 sps:$4 sm:$0xff]  }
 0x819   : > { %v4579_v39 = vld [vmem:[#allocation13 + $0x174] ss:$8 sps:$4 sm:$0xff]   ;;  %v4589_v51 = vld [vmem:[#allocation13 + $0x190] ss:$8 sps:$4 sm:$0xff]  }
 0x81a   : > { %2639 = vmatpush1.bf16.msra.mxu0 %v4023_v32  ;;  %2680 = vmatpush1.bf16.msra.mxu1 %v4025_v33  ;;  %v1858_v32 = vld [vmem:[#allocation11 + $0x3f0] sm:$0xff]  ;;  %v1855_v33 = vld [vmem:[#allocation11 + $0x3d8] sm:$0xff] }
 0x81b   : > { %2640 = vmatprep.subr.bf16.mxu0 %v4032_v58  ;;  %2681 = vmatprep.subr.bf16.mxu1 %v4034_v59  ;;  %v1859_v58 = vld [vmem:[#allocation11 + $0x3f8] sm:$0xff]  ;;  %v4079_v59 = vcombine.low %v1846_v46, %v1850_v48  ;;  %v4088_v61 = vcombine.high %v1854_v57, %v1858_v32  ;;  %v4087_v63 = vcombine.low %v1854_v57, %v1858_v32 }
 0x81c   : > { %v4090_v62 = vcombine.high %v1855_v33, %v1859_v58  ;;  %v4588_v46 = vld [vmem:[#allocation13 + $0x94] ss:$8 sps:$4 sm:$0xff]  }
 0x81d   : > { %v4591_v48 = vld [vmem:[#allocation13 + $0x194] ss:$8 sps:$4 sm:$0xff]  }
 0x81e   : > { %2641 = vmatpush1.bf16.msra.mxu0 %v4031_v1  ;;  %2682 = vmatpush1.bf16.msra.mxu1 %v4033_v3  ;;  %v4089_v1 = vcombine.low %v1855_v33, %v1859_v58  ;;  %v4534_v3 = vld [vmem:[#allocation13 + $0x4] ss:$8 sps:$4 sm:$0xff]   ;;  %v4600_v57 = vld [vmem:[#allocation13 + $0xb4] ss:$8 sps:$4 sm:$0xff]   ;;  %v4598_v33 = vld [vmem:[#allocation13 + $0xb0] ss:$8 sps:$4 sm:$0xff]  }
 0x81f   : > { %2642 = vmatprep.subr.bf16.mxu0 %v4040_v4  ;;  %2683 = vmatprep.subr.bf16.mxu1 %v4042_v5  ;;  %v4537_v4 = vld [vmem:[#allocation13 + $0x104] ss:$8 sps:$4 sm:$0xff]   ;;  %v4532_v5 = vld [vmem:[#allocation13] ss:$8 sps:$4 sm:$0xff]   ;;  %v4603_v32 = vld [vmem:[#allocation13 + $0x1b4] ss:$8 sps:$4 sm:$0xff]  }
 0x820   : > { %v4601_v58 = vld [vmem:[#allocation13 + $0x1b0] ss:$8 sps:$4 sm:$0xff]  }
 0x822   : > { %2643 = vmatpush1.bf16.msra.mxu0 %v4039_v10  ;;  %2684 = vmatpush1.bf16.msra.mxu1 %v4041_v11  ;;  %v4541_v10 = vld [vmem:[#allocation13 + $0x110] ss:$8 sps:$4 sm:$0xff]   ;;  %v4546_v11 = vld [vmem:[#allocation13 + $0x24] ss:$8 sps:$4 sm:$0xff]  }
 0x823   : > { %2644 = vmatprep.subr.bf16.mxu0 %v4048_v12  ;;  %2685 = vmatprep.subr.bf16.mxu1 %v4050_v14  ;;  %v4549_v12 = vld [vmem:[#allocation13 + $0x124] ss:$8 sps:$4 sm:$0xff]   ;;  %v4544_v14 = vld [vmem:[#allocation13 + $0x20] ss:$8 sps:$4 sm:$0xff]  }
 0x826   : > { %2645 = vmatpush1.bf16.msra.mxu0 %v4047_v22  ;;  %2686 = vmatpush1.bf16.msra.mxu1 %v4049_v23  ;;  %v4558_v22 = vld [vmem:[#allocation13 + $0x44] ss:$8 sps:$4 sm:$0xff]  }
 0x827   : > { %2646 = vmatprep.subr.bf16.mxu0 %v4056_v24  ;;  %2687 = vmatprep.subr.bf16.mxu1 %v4058_v25  ;;  %v4561_v23 = vld [vmem:[#allocation13 + $0x144] ss:$8 sps:$4 sm:$0xff]   ;;  %v4556_v24 = vld [vmem:[#allocation13 + $0x40] ss:$8 sps:$4 sm:$0xff]  }
 0x828   : > { %v4559_v25 = vld [vmem:[#allocation13 + $0x140] ss:$8 sps:$4 sm:$0xff]  }
 0x82a   : > { %2647 = vmatpush1.bf16.msra.mxu0 %v4055_v34  ;;  %2688 = vmatpush1.bf16.msra.mxu1 %v4057_v35  ;;  %v4570_v34 = vld [vmem:[#allocation13 + $0x64] ss:$8 sps:$4 sm:$0xff]  }
 0x82b   : > { %2648 = vmatprep.subr.bf16.mxu0 %v4064_v36  ;;  %2689 = vmatprep.subr.bf16.mxu1 %v4066_v37  ;;  %v4573_v35 = vld [vmem:[#allocation13 + $0x164] ss:$8 sps:$4 sm:$0xff]   ;;  %v4568_v36 = vld [vmem:[#allocation13 + $0x60] ss:$8 sps:$4 sm:$0xff]  }
 0x82c   : > { %v4571_v37 = vld [vmem:[#allocation13 + $0x160] ss:$8 sps:$4 sm:$0xff]  }
 0x82e   : > { %2649 = vmatpush1.bf16.msra.mxu0 %v4063_v42  ;;  %2690 = vmatpush1.bf16.msra.mxu1 %v4065_v43  ;;  %v4582_v42 = vld [vmem:[#allocation13 + $0x84] ss:$8 sps:$4 sm:$0xff]  }
 0x82f   : > { %2650 = vmatprep.subr.bf16.mxu0 %v4072_v44  ;;  %2691 = vmatprep.subr.bf16.mxu1 %v4074_v45  ;;  %v4585_v43 = vld [vmem:[#allocation13 + $0x184] ss:$8 sps:$4 sm:$0xff]   ;;  %v4580_v44 = vld [vmem:[#allocation13 + $0x80] ss:$8 sps:$4 sm:$0xff]  }
 0x830   : > { %v4583_v45 = vld [vmem:[#allocation13 + $0x180] ss:$8 sps:$4 sm:$0xff]  }
 0x832   : > { %2651 = vmatpush1.bf16.msra.mxu0 %v4071_v52  ;;  %2692 = vmatpush1.bf16.msra.mxu1 %v4073_v53  ;;  %v4594_v52 = vld [vmem:[#allocation13 + $0xa4] ss:$8 sps:$4 sm:$0xff]  }
 0x833   : > { %2652 = vmatprep.subr.bf16.mxu0 %v4080_v54  ;;  %2693 = vmatprep.subr.bf16.mxu1 %v4082_v55  ;;  %v4597_v53 = vld [vmem:[#allocation13 + $0x1a4] ss:$8 sps:$4 sm:$0xff]   ;;  %v4592_v54 = vld [vmem:[#allocation13 + $0xa0] ss:$8 sps:$4 sm:$0xff]  }
 0x834   : > { %v4595_v55 = vld [vmem:[#allocation13 + $0x1a0] ss:$8 sps:$4 sm:$0xff]  }
 0x836   : > { %2653 = vmatpush1.bf16.msra.mxu0 %v4079_v59  ;;  %2694 = vmatpush1.bf16.msra.mxu1 %v4081_v60  ;;  %v4606_v59 = vld [vmem:[#allocation13 + $0xc4] ss:$8 sps:$4 sm:$0xff]  }
 0x837   : > { %2654 = vmatprep.subr.bf16.mxu0 %v4088_v61  ;;  %2695 = vmatprep.subr.bf16.mxu1 %v4090_v62  ;;  %v4609_v60 = vld [vmem:[#allocation13 + $0x1c4] ss:$8 sps:$4 sm:$0xff]   ;;  %v4604_v61 = vld [vmem:[#allocation13 + $0xc0] ss:$8 sps:$4 sm:$0xff]  }
 0x838   : > { %v4607_v62 = vld [vmem:[#allocation13 + $0x1c0] ss:$8 sps:$4 sm:$0xff]  }
 0x83a   : > { %2655 = vmatpush1.bf16.msra.mxu0 %v4087_v63  ;;  %2696 = vmatpush1.bf16.msra.mxu1 %v4089_v1  ;;  %v4612_v63 = vld [vmem:[#allocation13 + $0xd4] ss:$8 sps:$4 sm:$0xff]  }
 0x83b   : > { %3502 = vmatprep.subr.bf16.mxu0 %v4534_v3  ;;  %3543 = vmatprep.subr.bf16.mxu1 %v4537_v4  ;;  %v4615_v1 = vld [vmem:[#allocation13 + $0x1d4] ss:$8 sps:$4 sm:$0xff]   ;;  %v4610_v3 = vld [vmem:[#allocation13 + $0xd0] ss:$8 sps:$4 sm:$0xff]  }
 0x83c   : > { %v4613_v4 = vld [vmem:[#allocation13 + $0x1d0] ss:$8 sps:$4 sm:$0xff]  }
 0x83d   : > { %2657 = vmatmul.mubr.bf16.vlgmr.msra.gmra.mrb[16].mxu0 %v5462_v56  ;;  %2698 = vmatmul.mubr.bf16.vlgmr.msra.gmra.mrb[16].mxu1 %v5462_v56  ;;  %v4553_v56 = vld [vmem:[#allocation13 + $0x130] ss:$8 sps:$4 sm:$0xff]  }
 0x83e   : > { %3503 = vmatpush1.bf16.msra.mxu0 %v4532_v5  ;;  %3544 = vmatpush1.bf16.msra.mxu1 %v4535_v6  ;;  %v4618_v5 = vld [vmem:[#allocation13 + $0xe4] ss:$8 sps:$4 sm:$0xff]  }
 0x83f   : > { %3504 = vmatprep.subr.bf16.mxu0 %v4540_v7  ;;  %3545 = vmatprep.subr.bf16.mxu1 %v4543_v8  ;;  %v4621_v6 = vld [vmem:[#allocation13 + $0x1e4] ss:$8 sps:$4 sm:$0xff]   ;;  %v4616_v7 = vld [vmem:[#allocation13 + $0xe0] ss:$8 sps:$4 sm:$0xff]  }
 0x840   : > { %v4619_v8 = vld [vmem:[#allocation13 + $0x1e0] ss:$8 sps:$4 sm:$0xff]  }
 0x842   : > { %3505 = vmatpush1.bf16.msra.mxu0 %v4538_v9  ;;  %3546 = vmatpush1.bf16.msra.mxu1 %v4541_v10  ;;  %v4624_v9 = vld [vmem:[#allocation13 + $0xf4] ss:$8 sps:$4 sm:$0xff]  }
 0x843   : > { %3506 = vmatprep.subr.bf16.mxu0 %v4546_v11  ;;  %3547 = vmatprep.subr.bf16.mxu1 %v4549_v12  ;;  %v4627_v10 = vld [vmem:[#allocation13 + $0x1f4] ss:$8 sps:$4 sm:$0xff]   ;;  %v4622_v11 = vld [vmem:[#allocation13 + $0xf0] ss:$8 sps:$4 sm:$0xff]  }
 0x844   : > { %v4625_v12 = vld [vmem:[#allocation13 + $0x1f0] ss:$8 sps:$4 sm:$0xff]  }
 0x846   : > { %3507 = vmatpush1.bf16.msra.mxu0 %v4544_v14  ;;  %3548 = vmatpush1.bf16.msra.mxu1 %v4547_v18  ;;  %v4630_v14 = vld [vmem:[#allocation13 + $0x204] ss:$8 sps:$4 sm:$0xff]  }
 0x847   : > { %3508 = vmatprep.subr.bf16.mxu0 %v4552_v19  ;;  %3549 = vmatprep.subr.bf16.mxu1 %v4555_v20  ;;  %v4633_v18 = vld [vmem:[#allocation13 + $0x304] ss:$8 sps:$4 sm:$0xff]   ;;  %v5471_v19 = vld [vmem:[%s5603_s12] sm:$0xff]  ;;  %s4938_s12 = scalar_lea.vmem %s4937_s1, 512 }
 0x848   : > { %v1865_v20 = vrot.slane %v5471_v19, %v5391_v17  ;;  %p4940_p1 = scmp.lt.s32.totalorder %s4938_s12, %s4932_s8 }
 0x84a   : > { %3509 = vmatpush1.bf16.msra.mxu0 %v4550_v21  ;;  %3550 = vmatpush1.bf16.msra.mxu1 %v4553_v56  ;;  %v1873_v21 = vrot.slane %v5471_v19, %v698_v0  ;;  %v1869_v56 = vrot.slane %v5471_v19, %v5388_v16  ;;  %p4941_p3 = por %p4940_p1, %p4939_p4 }
 0x84b   : > { %3510 = vmatprep.subr.bf16.mxu0 %v4558_v22  ;;  %3551 = vmatprep.subr.bf16.mxu1 %v4561_v23  ;;  %v1877_v22 = vrot.slane %v5471_v19, %v702_v2 }
 0x84c   : > { %p4942_p9 = pnand %p4941_p3, %p4935_p7 }
 0x84e   : > { %3511 = vmatpush1.bf16.msra.mxu0 %v4556_v24  ;;  %3552 = vmatpush1.bf16.msra.mxu1 %v4559_v25 }
 0x84f   : > { %3512 = vmatprep.subr.bf16.mxu0 %v4564_v26  ;;  %3553 = vmatprep.subr.bf16.mxu1 %v4567_v29 }
 0x852   : > { %3513 = vmatpush1.bf16.msra.mxu0 %v4562_v30  ;;  %3554 = vmatpush1.bf16.msra.mxu1 %v4565_v31 }
 0x853   : > { %3514 = vmatprep.subr.bf16.mxu0 %v4570_v34  ;;  %3555 = vmatprep.subr.bf16.mxu1 %v4573_v35 }
 0x856   : > { %3515 = vmatpush1.bf16.msra.mxu0 %v4568_v36  ;;  %3556 = vmatpush1.bf16.msra.mxu1 %v4571_v37 }
 0x857   : > { %3516 = vmatprep.subr.bf16.mxu0 %v4576_v38  ;;  %3557 = vmatprep.subr.bf16.mxu1 %v4579_v39 }
 0x85a   : > { %3517 = vmatpush1.bf16.msra.mxu0 %v4574_v40  ;;  %3558 = vmatpush1.bf16.msra.mxu1 %v4577_v41 }
 0x85b   : > { %3518 = vmatprep.subr.bf16.mxu0 %v4582_v42  ;;  %3559 = vmatprep.subr.bf16.mxu1 %v4585_v43  ;;  %v4628_v43 = vld [vmem:[#allocation13 + $0x200] ss:$8 sps:$4 sm:$0xff]  }
 0x85e   : > { %3519 = vmatpush1.bf16.msra.mxu0 %v4580_v44  ;;  %3560 = vmatpush1.bf16.msra.mxu1 %v4583_v45  ;;  %v4631_v44 = vld [vmem:[#allocation13 + $0x300] ss:$8 sps:$4 sm:$0xff]  }
 0x85f   : > { %3520 = vmatprep.subr.bf16.mxu0 %v4588_v46  ;;  %3561 = vmatprep.subr.bf16.mxu1 %v4591_v48  ;;  %v4636_v48 = vld [vmem:[#allocation13 + $0x214] ss:$8 sps:$4 sm:$0xff]  }
 0x862   : > { %3521 = vmatpush1.bf16.msra.mxu0 %v4586_v49  ;;  %3562 = vmatpush1.bf16.msra.mxu1 %v4589_v51  ;;  %v4639_v49 = vld [vmem:[#allocation13 + $0x314] ss:$8 sps:$4 sm:$0xff]   ;;  %v4634_v51 = vld [vmem:[#allocation13 + $0x210] ss:$8 sps:$4 sm:$0xff]  }
 0x863   : > { %3522 = vmatprep.subr.bf16.mxu0 %v4594_v52  ;;  %3563 = vmatprep.subr.bf16.mxu1 %v4597_v53  ;;  %v4637_v52 = vld [vmem:[#allocation13 + $0x310] ss:$8 sps:$4 sm:$0xff]   ;;  %v4642_v53 = vld [vmem:[#allocation13 + $0x224] ss:$8 sps:$4 sm:$0xff]  }
 0x866   : > { %3523 = vmatpush1.bf16.msra.mxu0 %v4592_v54  ;;  %3564 = vmatpush1.bf16.msra.mxu1 %v4595_v55  ;;  %v4645_v54 = vld [vmem:[#allocation13 + $0x324] ss:$8 sps:$4 sm:$0xff]   ;;  %v4640_v55 = vld [vmem:[#allocation13 + $0x220] ss:$8 sps:$4 sm:$0xff]  }
 0x867   : > { %3524 = vmatprep.subr.bf16.mxu0 %v4600_v57  ;;  %3565 = vmatprep.subr.bf16.mxu1 %v4603_v32  ;;  %v4643_v57 = vld [vmem:[#allocation13 + $0x320] ss:$8 sps:$4 sm:$0xff]   ;;  %v4648_v32 = vld [vmem:[#allocation13 + $0x234] ss:$8 sps:$4 sm:$0xff]  }
 0x86a   : > { %3525 = vmatpush1.bf16.msra.mxu0 %v4598_v33  ;;  %3566 = vmatpush1.bf16.msra.mxu1 %v4601_v58  ;;  %v4651_v33 = vld [vmem:[#allocation13 + $0x334] ss:$8 sps:$4 sm:$0xff]   ;;  %v4646_v58 = vld [vmem:[#allocation13 + $0x230] ss:$8 sps:$4 sm:$0xff]  }
 0x86b   : > { %3526 = vmatprep.subr.bf16.mxu0 %v4606_v59  ;;  %3567 = vmatprep.subr.bf16.mxu1 %v4609_v60  ;;  %v4649_v59 = vld [vmem:[#allocation13 + $0x330] ss:$8 sps:$4 sm:$0xff]   ;;  %v4654_v60 = vld [vmem:[#allocation13 + $0x244] ss:$8 sps:$4 sm:$0xff]  }
 0x86e   : > { %3527 = vmatpush1.bf16.msra.mxu0 %v4604_v61  ;;  %3568 = vmatpush1.bf16.msra.mxu1 %v4607_v62  ;;  %v4657_v61 = vld [vmem:[#allocation13 + $0x344] ss:$8 sps:$4 sm:$0xff]   ;;  %v4652_v62 = vld [vmem:[#allocation13 + $0x240] ss:$8 sps:$4 sm:$0xff]  }
 0x86f   : > { %3528 = vmatprep.subr.bf16.mxu0 %v4612_v63  ;;  %3569 = vmatprep.subr.bf16.mxu1 %v4615_v1  ;;  %v4655_v63 = vld [vmem:[#allocation13 + $0x340] ss:$8 sps:$4 sm:$0xff]   ;;  %v4660_v1 = vld [vmem:[#allocation13 + $0x254] ss:$8 sps:$4 sm:$0xff]  }
 0x872   : > { %3529 = vmatpush1.bf16.msra.mxu0 %v4610_v3  ;;  %3570 = vmatpush1.bf16.msra.mxu1 %v4613_v4  ;;  %v4663_v3 = vld [vmem:[#allocation13 + $0x354] ss:$8 sps:$4 sm:$0xff]   ;;  %v4658_v4 = vld [vmem:[#allocation13 + $0x250] ss:$8 sps:$4 sm:$0xff]  }
 0x873   : > { %3530 = vmatprep.subr.bf16.mxu0 %v4618_v5  ;;  %3571 = vmatprep.subr.bf16.mxu1 %v4621_v6  ;;  %v4661_v5 = vld [vmem:[#allocation13 + $0x350] ss:$8 sps:$4 sm:$0xff]   ;;  %v4666_v6 = vld [vmem:[#allocation13 + $0x264] ss:$8 sps:$4 sm:$0xff]  }
 0x876   : > { %3531 = vmatpush1.bf16.msra.mxu0 %v4616_v7  ;;  %3572 = vmatpush1.bf16.msra.mxu1 %v4619_v8  ;;  %v4669_v7 = vld [vmem:[#allocation13 + $0x364] ss:$8 sps:$4 sm:$0xff]   ;;  %v4664_v8 = vld [vmem:[#allocation13 + $0x260] ss:$8 sps:$4 sm:$0xff]  }
 0x877   : > { %3532 = vmatprep.subr.bf16.mxu0 %v4624_v9  ;;  %3573 = vmatprep.subr.bf16.mxu1 %v4627_v10  ;;  %v4667_v9 = vld [vmem:[#allocation13 + $0x360] ss:$8 sps:$4 sm:$0xff]   ;;  %v4672_v10 = vld [vmem:[#allocation13 + $0x274] ss:$8 sps:$4 sm:$0xff]  }
 0x87a   : > { %3533 = vmatpush1.bf16.msra.mxu0 %v4622_v11  ;;  %3574 = vmatpush1.bf16.msra.mxu1 %v4625_v12  ;;  %v4675_v11 = vld [vmem:[#allocation13 + $0x374] ss:$8 sps:$4 sm:$0xff]   ;;  %v4670_v12 = vld [vmem:[#allocation13 + $0x270] ss:$8 sps:$4 sm:$0xff]  }
 0x87b   : > { %3584 = vmatprep.subr.bf16.mxu0 %v4630_v14  ;;  %3625 = vmatprep.subr.bf16.mxu1 %v4633_v18  ;;  %v4673_v14 = vld [vmem:[#allocation13 + $0x370] ss:$8 sps:$4 sm:$0xff]   ;;  %v4678_v18 = vld [vmem:[#allocation13 + $0x284] ss:$8 sps:$4 sm:$0xff]  }
 0x8d0   : > { %v2576_v23 = vpop.f32.mrb[12].mxu0  ;;  %v2617_v24 = vpop.f32.mrb[12].mxu1 }
 0x8d1   : > { %v2577_v25 = vadd.f32 %v2576_v23, %v1865_v20  ;;  %v2618_v26 = vadd.f32 %v2617_v24, %v1873_v21  ;;  %v2578_v29 = vpop.f32.mrb[13].mxu0  ;;  %v2619_v30 = vpop.f32.mrb[13].mxu1  ;;  %v4681_v20 = vld [vmem:[#allocation13 + $0x384] ss:$8 sps:$4 sm:$0xff]   ;;  %v4676_v21 = vld [vmem:[#allocation13 + $0x280] ss:$8 sps:$4 sm:$0xff]  }
 0x8d2   : > { %v2579_v31 = vadd.f32 %v2578_v29, %v1869_v56  ;;  %v2620_v34 = vadd.f32 %v2619_v30, %v1877_v22  ;;  %v2580_v35 = vpop.f32.mrb[14].mxu0  ;;  %v2621_v36 = vpop.f32.mrb[14].mxu1  ;;  %v4679_v56 = vld [vmem:[#allocation13 + $0x380] ss:$8 sps:$4 sm:$0xff]   ;;  %v4684_v22 = vld [vmem:[#allocation13 + $0x294] ss:$8 sps:$4 sm:$0xff]  }
 0x8d3   : > { %v2706_v37 = vpack.c.bf16 %v2577_v25, %v2577_v25  ;;  %v2708_v38 = vpack.c.bf16 %v2618_v26, %v2618_v26  ;;  %v2581_v0 = vpop.f32.mrb[15].mxu0  ;;  %v2622_v39 = vpop.f32.mrb[15].mxu1  ;;  %v4687_v23 = vld [vmem:[#allocation13 + $0x394] ss:$8 sps:$4 sm:$0xff]   ;;  %v4682_v24 = vld [vmem:[#allocation13 + $0x290] ss:$8 sps:$4 sm:$0xff]  }
 0x8d4   : > { %v2707_v40 = vpack.c.bf16 %v2579_v31, %v2579_v31  ;;  %v2709_v41 = vpack.c.bf16 %v2620_v34, %v2620_v34  ;;  %v4685_v25 = vld [vmem:[#allocation13 + $0x390] ss:$8 sps:$4 sm:$0xff]   ;;  %v4690_v26 = vld [vmem:[#allocation13 + $0x2a4] ss:$8 sps:$4 sm:$0xff]   ;;  %v4688_v30 = vld [vmem:[#allocation13 + $0x2a0] ss:$8 sps:$4 sm:$0xff]  }
 0x8d5   : > { %v2714_v45 = vmax.bf16 %v5025_v13, %v2706_v37  ;;  %v2716_v46 = vmax.bf16 %v5025_v13, %v2708_v38  ;;  %v4693_v29 = vld [vmem:[#allocation13 + $0x3a4] ss:$8 sps:$4 sm:$0xff]   ;;  %v4691_v31 = vld [vmem:[#allocation13 + $0x3a0] ss:$8 sps:$4 sm:$0xff]   ;;  %v4696_v34 = vld [vmem:[#allocation13 + $0x2b4] ss:$8 sps:$4 sm:$0xff]  }
 0x8d6   : > { %v2715_v42 = vmax.bf16 %v5025_v13, %v2707_v40  ;;  %v2717_v2 = vmax.bf16 %v5025_v13, %v2709_v41  ;;  %v4699_v35 = vld [vmem:[#allocation13 + $0x3b4] ss:$8 sps:$4 sm:$0xff]   ;;  %v4694_v36 = vld [vmem:[#allocation13 + $0x2b0] ss:$8 sps:$4 sm:$0xff]   ;;  %v4702_v38 = vld [vmem:[#allocation13 + $0x2c4] ss:$8 sps:$4 sm:$0xff]  }
 0x8d7   : > { %v4697_v37 = vld [vmem:[#allocation13 + $0x3b0] ss:$8 sps:$4 sm:$0xff]   ;;  %v4705_v0 = vld [vmem:[#allocation13 + $0x3c4] ss:$8 sps:$4 sm:$0xff]   ;;  %v4700_v39 = vld [vmem:[#allocation13 + $0x2c0] ss:$8 sps:$4 sm:$0xff]  }
 0x8d8   : > { %3534 = vmatprep.mubr.bf16.mxu0 %v2715_v42  ;;  %3575 = vmatprep.mubr.bf16.mxu1 %v2717_v2  ;;  %v4703_v40 = vld [vmem:[#allocation13 + $0x3c0] ss:$8 sps:$4 sm:$0xff]   ;;  %v4708_v41 = vld [vmem:[#allocation13 + $0x2d4] ss:$8 sps:$4 sm:$0xff]   ;;  %v1888_v2 = vsub.s32 6, %v5385_v15 }
 0x8d9   : > { %3535 = vmatmul.mubr.bf16.vlgmr.msra.gmra.mrb[20].mxu0 %v2714_v45  ;;  %3576 = vmatmul.mubr.bf16.vlgmr.msra.gmra.mrb[20].mxu1 %v2716_v46  ;;  %v4711_v42 = vld [vmem:[#allocation13 + $0x3d4] ss:$8 sps:$4 sm:$0xff]   ;;  %v1892_v45 = vsub.s32 7, %v5385_v15  ;;  %v4714_v46 = vld [vmem:[#allocation13 + $0x2e4] ss:$8 sps:$4 sm:$0xff]  }
 0x8da   : > { %3585 = vmatpush1.bf16.msra.mxu0 %v4628_v43  ;;  %3626 = vmatpush1.bf16.msra.mxu1 %v4631_v44  ;;  %v4706_v43 = vld [vmem:[#allocation13 + $0x2d0] ss:$8 sps:$4 sm:$0xff]  }
 0x8db   : > { %3586 = vmatprep.subr.bf16.mxu0 %v4636_v48  ;;  %3627 = vmatprep.subr.bf16.mxu1 %v4639_v49  ;;  %v4709_v44 = vld [vmem:[#allocation13 + $0x3d0] ss:$8 sps:$4 sm:$0xff]   ;;  %v4717_v48 = vld [vmem:[#allocation13 + $0x3e4] ss:$8 sps:$4 sm:$0xff]   ;;  %v1881_v49 = vrot.slane %v5471_v19, %v706_v27 }
 0x8de   : > { %3587 = vmatpush1.bf16.msra.mxu0 %v4634_v51  ;;  %3628 = vmatpush1.bf16.msra.mxu1 %v4637_v52  ;;  %v1889_v51 = vrot.slane %v5471_v19, %v1888_v2  ;;  %v1885_v52 = vrot.slane %v5471_v19, %v710_v28  ;;  %v4718_v28 = vld [vmem:[#allocation13 + $0x2f0] ss:$8 sps:$4 sm:$0xff]  }
 0x8df   : > { %3588 = vmatprep.subr.bf16.mxu0 %v4642_v53  ;;  %3629 = vmatprep.subr.bf16.mxu1 %v4645_v54  ;;  %v1893_v53 = vrot.slane %v5471_v19, %v1892_v45  ;;  %v4712_v54 = vld [vmem:[#allocation13 + $0x2e0] ss:$8 sps:$4 sm:$0xff]   ;;  %v4721_v19 = vld [vmem:[#allocation13 + $0x3f0] ss:$8 sps:$4 sm:$0xff]  }
 0x8e2   : > { %3589 = vmatpush1.bf16.msra.mxu0 %v4640_v55  ;;  %3630 = vmatpush1.bf16.msra.mxu1 %v4643_v57  ;;  %v4715_v55 = vld [vmem:[#allocation13 + $0x3e0] ss:$8 sps:$4 sm:$0xff]   ;;  %v4720_v57 = vld [vmem:[#allocation13 + $0x2f4] ss:$8 sps:$4 sm:$0xff]  }
 0x8e3   : > { %3590 = vmatprep.subr.bf16.mxu0 %v4648_v32  ;;  %3631 = vmatprep.subr.bf16.mxu1 %v4651_v33  ;;  %v4723_v32 = vld [vmem:[#allocation13 + $0x3f4] ss:$8 sps:$4 sm:$0xff]  }
 0x8e6   : > { %3591 = vmatpush1.bf16.msra.mxu0 %v4646_v58  ;;  %3632 = vmatpush1.bf16.msra.mxu1 %v4649_v59 }
 0x8e7   : > { %3592 = vmatprep.subr.bf16.mxu0 %v4654_v60  ;;  %3633 = vmatprep.subr.bf16.mxu1 %v4657_v61 }
 0x8ea   : > { %3593 = vmatpush1.bf16.msra.mxu0 %v4652_v62  ;;  %3634 = vmatpush1.bf16.msra.mxu1 %v4655_v63 }
 0x8eb   : > { %3594 = vmatprep.subr.bf16.mxu0 %v4660_v1  ;;  %3635 = vmatprep.subr.bf16.mxu1 %v4663_v3 }
 0x8ee   : > { %3595 = vmatpush1.bf16.msra.mxu0 %v4658_v4  ;;  %3636 = vmatpush1.bf16.msra.mxu1 %v4661_v5 }
 0x8ef   : > { %3596 = vmatprep.subr.bf16.mxu0 %v4666_v6  ;;  %3637 = vmatprep.subr.bf16.mxu1 %v4669_v7 }
 0x8f2   : > { %3597 = vmatpush1.bf16.msra.mxu0 %v4664_v8  ;;  %3638 = vmatpush1.bf16.msra.mxu1 %v4667_v9 }
 0x8f3   : > { %3598 = vmatprep.subr.bf16.mxu0 %v4672_v10  ;;  %3639 = vmatprep.subr.bf16.mxu1 %v4675_v11 }
 0x8f6   : > { %3599 = vmatpush1.bf16.msra.mxu0 %v4670_v12  ;;  %3640 = vmatpush1.bf16.msra.mxu1 %v4673_v14  ;;  %v2850_v14 = vld [vmem:[%s5604_s24] sm:$0x3] }
 0x8f7   : > { %3600 = vmatprep.subr.bf16.mxu0 %v4678_v18  ;;  %3641 = vmatprep.subr.bf16.mxu1 %v4681_v20  ;;  %v2855_v18 = vrot.slane %v2850_v14, %v5391_v17  ;;  %v2859_v20 = vrot.slane %v2850_v14, %v5388_v16 }
 0x8fa   : > { %3601 = vmatpush1.bf16.msra.mxu0 %v4676_v21  ;;  %3642 = vmatpush1.bf16.msra.mxu1 %v4679_v56 }
 0x8fb   : > { %3602 = vmatprep.subr.bf16.mxu0 %v4684_v22  ;;  %3643 = vmatprep.subr.bf16.mxu1 %v4687_v23 }
 0x8fe   : > { %3603 = vmatpush1.bf16.msra.mxu0 %v4682_v24  ;;  %3644 = vmatpush1.bf16.msra.mxu1 %v4685_v25 }
 0x8ff   : > { %3604 = vmatprep.subr.bf16.mxu0 %v4690_v26  ;;  %3645 = vmatprep.subr.bf16.mxu1 %v4693_v29 }
 0x902   : > { %3605 = vmatpush1.bf16.msra.mxu0 %v4688_v30  ;;  %3646 = vmatpush1.bf16.msra.mxu1 %v4691_v31 }
 0x903   : > { %3606 = vmatprep.subr.bf16.mxu0 %v4696_v34  ;;  %3647 = vmatprep.subr.bf16.mxu1 %v4699_v35 }
 0x906   : > { %3607 = vmatpush1.bf16.msra.mxu0 %v4694_v36  ;;  %3648 = vmatpush1.bf16.msra.mxu1 %v4697_v37 }
 0x907   : > { %3608 = vmatprep.subr.bf16.mxu0 %v4702_v38  ;;  %3649 = vmatprep.subr.bf16.mxu1 %v4705_v0 }
 0x90a   : > { %3609 = vmatpush1.bf16.msra.mxu0 %v4700_v39  ;;  %3650 = vmatpush1.bf16.msra.mxu1 %v4703_v40 }
 0x90b   : > { %3610 = vmatprep.subr.bf16.mxu0 %v4708_v41  ;;  %3651 = vmatprep.subr.bf16.mxu1 %v4711_v42 }
 0x90e   : > { %3611 = vmatpush1.bf16.msra.mxu0 %v4706_v43  ;;  %3652 = vmatpush1.bf16.msra.mxu1 %v4709_v44 }
 0x90f   : > { %3612 = vmatprep.subr.bf16.mxu0 %v4714_v46  ;;  %3653 = vmatprep.subr.bf16.mxu1 %v4717_v48 }
 0x910   : > { %v2658_v33 = vpop.f32.mrb[16].mxu0  ;;  %v2699_v58 = vpop.f32.mrb[16].mxu1 }
 0x911   : > { %v2659_v59 = vadd.f32 %v2658_v33, %v1881_v49  ;;  %v2700_v27 = vadd.f32 %v2699_v58, %v1889_v51  ;;  %v2660_v60 = vpop.f32.mrb[17].mxu0  ;;  %v2701_v61 = vpop.f32.mrb[17].mxu1 }
 0x912   : > { %v2661_v62 = vadd.f32 %v2660_v60, %v1885_v52  ;;  %v2702_v63 = vadd.f32 %v2701_v61, %v1893_v53  ;;  %v2662_v1 = vpop.f32.mrb[18].mxu0  ;;  %v2703_v15 = vpop.f32.mrb[18].mxu1  ;;  %3613 = vmatpush1.bf16.msra.mxu0 %v4712_v54  ;;  %3654 = vmatpush1.bf16.msra.mxu1 %v4715_v55 }
 0x913   : > { %v2710_v3 = vpack.c.bf16 %v2659_v59, %v2659_v59  ;;  %v2712_v4 = vpack.c.bf16 %v2700_v27, %v2700_v27  ;;  %v2663_v5 = vpop.f32.mrb[19].mxu0  ;;  %v2704_v6 = vpop.f32.mrb[19].mxu1  ;;  %3614 = vmatprep.subr.bf16.mxu0 %v4720_v57  ;;  %3655 = vmatprep.subr.bf16.mxu1 %v4723_v32 }
 0x914   : > { %v2711_v7 = vpack.c.bf16 %v2661_v62, %v2661_v62  ;;  %v2713_v8 = vpack.c.bf16 %v2702_v63, %v2702_v63 }
 0x915   : > { %v2718_v11 = vmax.bf16 %v5025_v13, %v2710_v3  ;;  %v2720_v12 = vmax.bf16 %v5025_v13, %v2712_v4 }
 0x916   : > { %v2719_v9 = vmax.bf16 %v5025_v13, %v2711_v7  ;;  %v2721_v10 = vmax.bf16 %v5025_v13, %v2713_v8  ;;  %3615 = vmatpush1.bf16.msra.mxu0 %v4718_v28  ;;  %3656 = vmatpush1.bf16.msra.mxu1 %v4721_v19 }
 0x918   : > { %3616 = vmatprep.mubr.bf16.mxu0 %v2719_v9  ;;  %3657 = vmatprep.mubr.bf16.mxu1 %v2721_v10 }
 0x919   : > { %3617 = vmatmul.mubr.bf16.vlgmr.msra.gmra.mrb[24].mxu0 %v2718_v11  ;;  %3658 = vmatmul.mubr.bf16.vlgmr.msra.gmra.mrb[24].mxu1 %v2720_v12 }
 0x9ac   : > { %v3536_v21 = vpop.f32.mrb[20].mxu0  ;;  %v3577_v56 = vpop.f32.mrb[20].mxu1 }
 0x9ad   : > { %v3537_v22 = vadd.f32 %v3536_v21, %v2855_v18  ;;  %v3538_v23 = vpop.f32.mrb[21].mxu0  ;;  %v3579_v24 = vpop.f32.mrb[21].mxu1 }
 0x9ae   : > { %v3539_v25 = vadd.f32 %v3538_v23, %v2859_v20  ;;  %v3540_v26 = vpop.f32.mrb[22].mxu0  ;;  %v3581_v13 = vpop.f32.mrb[22].mxu1 }
 0x9af   : > { %v3578_v29 = vadd.f32 %v3577_v56, %v3537_v22  ;;  %v3541_v30 = vpop.f32.mrb[23].mxu0  ;;  %v3582_v31 = vpop.f32.mrb[23].mxu1 }
 0x9b0   : > { %v3580_v34 = vadd.f32 %v3579_v24, %v3539_v25 }
 0x9ec   : > { %v3618_v35 = vpop.f32.mrb[24].mxu0  ;;  %v3659_v36 = vpop.f32.mrb[24].mxu1 }
 0x9ed   : > { %v3619_v37 = vadd.f32 %v3618_v35, %v3578_v29  ;;  %v3620_v17 = vpop.f32.mrb[25].mxu0  ;;  %v3661_v38 = vpop.f32.mrb[25].mxu1 }
 0x9ee   : > { %v3621_v16 = vadd.f32 %v3620_v17, %v3580_v34  ;;  %v3622_v0 = vpop.f32.mrb[26].mxu0  ;;  %v3663_v39 = vpop.f32.mrb[26].mxu1 }
 0x9ef   : > { %v3660_v40 = vadd.f32 %v3659_v36, %v3619_v37  ;;  %v3623_v41 = vpop.f32.mrb[27].mxu0  ;;  %v3664_v42 = vpop.f32.mrb[27].mxu1 }
 0x9f0   : > { %v3662_v2 = vadd.f32 %v3661_v38, %v3621_v16 }
 0x9f1   : > { %v3666_v43 = vadd.f32 %v3660_v40, %v5433_v47 }
 0x9f2   : > { %v3667_v44 = vadd.f32 %v3662_v2, %v5436_v50 }
 0x9f3   : > { %3668 = vst [vmem:[%s539_s19] sm:$0xff] %v3666_v43 }
 0x9f4   : > { %3669 = vst [vmem:[%s539_s19 + $0x8] sm:$0xff] %v3667_v44 }
 0x9f5   : > { %4945 = shalt.err (!%p4942_p9)
}
 0x9f6   : > { %s4946_s30 = scalar_lea.hbm %s5514_s29, 256  ;;  %s4950_s24 = scalar_lea.hbm %s5605_s22, 512 }
 0x9f7   : > { %p4947_p13 = scmp.ne.s32.totalorder %s5514_s29, %s4946_s30  ;;  %p4951_p8 = scmp.lt.u32.totalorder %s5514_s29, %s5605_s22 }
 0x9f8   : > { %p4952_p10 = scmp.lt.u32.totalorder %s4950_s24, %s4946_s30  ;;  %p4954_p6 = scmp.lt.u32.totalorder %s4946_s30, %s5514_s29 }
 0x9f9   : > { %p4948_p0 = pnand %p4947_p13, %p5606_p12 }
 0x9fa   : > { %p4953_p11 = por %p4952_p10, %p4951_p8 }
 0x9fb   : > { %p4949_p2 = pneg %p4948_p0 }
 0x9fc   : > { %p4955_p5 = por %p4954_p6, %p4953_p11 }
 0x9fe   : > { %p4956_p7 = pnand %p4955_p5, %p4949_p2 }
 0xa00   : > { %4959 = shalt.err (!%p4956_p7)
}
 0xa01   : > { %4252 = dma.vmem_to_hbm [thread:$0]  (%p5606_p12), %s5516_s16, 256, %s5514_s29, %s3671_s14  }
 0xa02 PF: > { %s3697_s10 = sand.u32 1, %s4998_s25   ;;  %p5607_p4 = scmp.ne.s32.totalorder %s5592_s7, 0 }
 0xa03   : > { %p5608_p1 = scmp.ge.s32.totalorder %s5010_s28, 2  ;;  %s3698_s21 = scalar_lea.sflag [#allocation4], %s3697_s10 }
 0xa05   : > { %p4278_p3 = pnand %p5608_p1, %p5607_p4 }
 0xa07   : > { %4993 = dma.done.wait (!%p4278_p3), %s3698_s21, 256  }
 0xa08   : > { %4995 = vsyncadd (!%p4278_p3), %s3698_s21, 4294967040  ;;  %p29_p9 = scmp.ge.s32.totalorder %s5266_s18, 4   ;;  %s5609_s25 = smov %s5002_s26 }
 0xa09   : > { %s5610_s26 = smov %s5006_s27  ;;  %s5611_s27 = smov %s5277_s20 }
 0xa0a   : > { %s5612_s28 = smov %s5266_s18  ;;  %31 = sbr.rel (!%p29_p9) target bundleno = 16 (0x10), region = 141 }
 0xa11   :  { %3703 = vsyncpa [#allocation3], 1 }
 0xa12   :  { %3705 = vsyncpa [#allocation3 + $0x1], 1 }
 0xa13   :  { %3706 = vsyncpa [#allocation6], 1 }
 0xa14   :  { %3707 = vsyncpa [#allocation9], 1 }
 0xa15   :  { %3708 = vsyncpa [#allocation12], 1 }
 0xa16   :  { %3709 = vsyncpa [#allocation4], 1 }
 0xa17   :  { %3711 = vsyncpa [#allocation4 + $0x1], 1 }

</bundles_post_ra>
